<compile_context>
chip_gen: v6e
topology: v6e:2x2x1
jax: 0.10.0
libtpu: 0.0.40
codegen_flags: <defaults>
</compile_context>

<pallas_src>
import functools
import numpy as np
import jax
import jax.numpy as jnp
from jax.experimental import pallas as pl
from jax.experimental.pallas import tpu as pltpu

# ------------------------- configuration (small) ------------------------- #
NUM_QUBITS = 4
NUM_LAYERS = 2
NUM_REUPLOAD = 1                                # -> num_reupload + 1 = 2 blocks
MEASUREMENTS = ((0, "Z"), (1, "X"), (2, "Y"))   # (wire, pauli)
BATCH = 8

DIM = 2 ** NUM_QUBITS
NBLOCKS = NUM_REUPLOAD + 1
NMEAS = len(MEASUREMENTS)
OUT_PAD = 128                                   # lane-dense output width

# --------------------- parameter / constant glue (numpy) ------------------ #
_I2 = np.eye(2, dtype=np.complex128)
_PAULI = {
    "X": np.array([[0, 1], [1, 0]], dtype=np.complex128),
    "Y": np.array([[0, -1j], [1j, 0]], dtype=np.complex128),
    "Z": np.array([[1, 0], [0, -1]], dtype=np.complex128),
}
_A2 = np.array([[0.0, -1.0], [1.0, 0.0]], dtype=np.complex128)   # -i*Y ("signed flip")


def _kron_list(mats):
    return functools.reduce(np.kron, mats)


def _ry(theta):
    c, s = np.cos(theta / 2.0), np.sin(theta / 2.0)
    return np.array([[c, -s], [s, c]], dtype=np.complex128)


def _rot(phi, theta, omega):
    # qml.Rot(phi, theta, omega) = RZ(omega) RY(theta) RZ(phi)
    c, s = np.cos(theta / 2.0), np.sin(theta / 2.0)
    return np.array(
        [[np.exp(-0.5j * (phi + omega)) * c, -np.exp(0.5j * (phi - omega)) * s],
         [np.exp(-0.5j * (phi - omega)) * s, np.exp(0.5j * (phi + omega)) * c]],
        dtype=np.complex128)


def _single_qubit_full(gate, wire, n):
    return _kron_list([gate if w == wire else _I2 for w in range(n)])


def _cnot_full(n, control, target):
    D = 2 ** n
    M = np.zeros((D, D), dtype=np.complex128)
    for k in range(D):
        j = k ^ (1 << (n - 1 - target)) if (k >> (n - 1 - control)) & 1 else k
        M[j, k] = 1.0
    return M


def build_block_unitaries(weights, n):
    """weights: (nblocks, nlayers, n, 3) -> list of (2^n, 2^n) complex unitaries
    implementing qml.StronglyEntanglingLayers (default ranges) per re-upload block."""
    nblocks, nlayers = weights.shape[0], weights.shape[1]
    blocks = []
    for b in range(nblocks):
        U = np.eye(2 ** n, dtype=np.complex128)
        for l in range(nlayers):
            rot_full = _kron_list([_rot(*weights[b, l, w]) for w in range(n)])
            U = rot_full @ U
            if n > 1:
                r = (l % (n - 1)) + 1
                for w in range(n):
                    U = _cnot_full(n, w, (w + r) % n) @ U
        blocks.append(U)
    return blocks


def build_observables(measurements, n):
    return [_single_qubit_full(_PAULI[p], w, n) for (w, p) in measurements]


def pack_op(M):
    """(D,D) complex M -> (2D,2D) real R with  packed(M psi) = packed(psi) @ R,
    packed row layout [re | im]."""
    Mt = np.asarray(M).T
    Mr = Mt.real.astype(np.float32)
    Mi = Mt.imag.astype(np.float32)
    top = np.concatenate([Mr, Mi], axis=1)
    bot = np.concatenate([-Mi, Mr], axis=1)
    return np.concatenate([top, bot], axis=0)


def build_kernel_constants(weights_np, n, measurements):
    """All data-independent circuit constants (host precompute).

    u0p : (2D, 2D)            packed first entangling-block unitary U_0
    g   : (NR, 2D, 2^n*2D)    re-upload block b: column block T = pack(U_b @ A_T)
    r   : (2^n*2D, 2D)        segment-sum folding the 2^n subset terms back
    obs : (2D, k*2D)          packed non-Z observables (zeros dummy if none)
    """
    D = 2 ** n
    D2 = 2 * D
    nT = 2 ** n
    blocks = build_block_unitaries(weights_np, n)
    nblocks = len(blocks)

    u0p = pack_op(blocks[0])

    a_full = [_single_qubit_full(_A2, q, n) for q in range(n)]
    g = np.zeros((max(nblocks - 1, 1), D2, nT * D2), dtype=np.float32)
    for b in range(1, nblocks):
        for t in range(nT):
            M = np.eye(D, dtype=np.complex128)
            for q in range(n):
                if (t >> (n - 1 - q)) & 1:
                    M = a_full[q] @ M
            g[b - 1, :, t * D2:(t + 1) * D2] = pack_op(blocks[b] @ M)

    r = np.zeros((nT * D2, D2), dtype=np.float32)
    for t in range(nT):
        r[t * D2:(t + 1) * D2, :] = np.eye(D2, dtype=np.float32)

    nonz = [(w, p) for (w, p) in measurements if p != "Z"]
    if nonz:
        obs = np.concatenate(
            [pack_op(_single_qubit_full(_PAULI[p], w, n)) for (w, p) in nonz], axis=1)
    else:
        obs = np.zeros((D2, D2), dtype=np.float32)
    return u0p, g, r, obs, blocks


# ------------------------------ Pallas kernel ----------------------------- #
def quantum_mlp_kernel(meas_spec, n_reup, x_ref, u0_ref, g_ref, r_ref, obs_ref,
                       out_ref):
    Bt, n = x_ref.shape
    D2 = u0_ref.shape[0]                    # 2 * 2**n  (packed width)
    D = D2 // 2
    GW = g_ref.shape[-1]                    # 2**n * D2

    x = x_ref[...]                          # (Bt, n)
    xc = jnp.cos(0.5 * x)                   # hoisted: 2 EUP calls total
    xs = jnp.sin(0.5 * x)

    mxu_dot = functools.partial(jnp.dot, preferred_element_type=jnp.float32,
                                precision=jax.lax.Precision.HIGHEST)

    # --- block 0: AngleEmbedding on |0...0> is a product state (no data movement)
    col = jax.lax.broadcasted_iota(jnp.int32, (Bt, D2), 1)
    amp = None
    for q in range(n):
        m = 1 << (n - 1 - q)
        fac = jnp.where((col & m) != 0,
                        jnp.broadcast_to(xs[:, q:q + 1], (Bt, D2)),
                        jnp.broadcast_to(xc[:, q:q + 1], (Bt, D2)))
        amp = fac if amp is None else amp * fac
    amp = jnp.where(col < D, amp, 0.0)      # re half = product amps, im half = 0

    # entangling block 0: one packed-complex MXU matmul
    S = mxu_dot(amp, u0_ref[...])

    # --- re-upload blocks:  U_b E(x) psi = sum_T coeff_T(x) * (U_b A_T) psi
    if n_reup > 0:
        lcol = jax.lax.broadcasted_iota(jnp.int32, (Bt, GW), 1)
        ce = None                           # coefficients expanded once, reused per block
        for q in range(n):
            mT = (1 << (n - 1 - q)) * D2    # subset bit of the lane-block index T
            fac = jnp.where((lcol & mT) != 0,
                            jnp.broadcast_to(xs[:, q:q + 1], (Bt, GW)),
                            jnp.broadcast_to(xc[:, q:q + 1], (Bt, GW)))
            ce = fac if ce is None else ce * fac
        for b in range(n_reup):
            y = mxu_dot(S, g_ref[b])        # (Bt, 2^n*D2): one wide MXU push
            S = mxu_dot(ce * y, r_ref[...]) # segment-sum back to (Bt, D2)

    # --- measurements ---
    out_cols = jax.lax.broadcasted_iota(jnp.int32, out_ref.shape, 1)
    acc = jnp.zeros(out_ref.shape, dtype=jnp.float32)

    has_nonz = any(p != "Z" for (_, p) in meas_spec)
    if has_nonz:                            # all X/Y observables in ONE MXU push
        V = mxu_dot(S, obs_ref[...])        # (Bt, k*D2) = packed (O_m psi) blocks

    j = 0
    for midx, (w, pauli) in enumerate(meas_spec):
        if pauli == "Z":
            m = 1 << (n - 1 - w)
            zsgn = jnp.where((col & m) != 0, -1.0, 1.0)
            e = jnp.sum(zsgn * (S * S), axis=1, keepdims=True)
        else:
            e = jnp.sum(S * V[:, j * D2:(j + 1) * D2], axis=1, keepdims=True)
            j += 1
        acc = acc + jnp.where(out_cols == midx, e, 0.0)

    out_ref[...] = acc                      # lane-dense (Bt, 128) unmasked store


def quantum_mlp_forward(x, u0p, g, r, obs, meas_spec, num_reupload):
    B, n = x.shape
    # Single batch tile below 16 rows (a split only adds per-step overhead); 2-way
    # "parallel" split at larger batch so v7x can shard it across its 2 TensorCores.
    b_tile = B if B < 16 else B // 2
    kernel = functools.partial(quantum_mlp_kernel, tuple(meas_spec), num_reupload)

    out = pl.pallas_call(
        kernel,
        out_shape=jax.ShapeDtypeStruct((B, OUT_PAD), jnp.float32),
        grid=(B // b_tile,),
        in_specs=[
            pl.BlockSpec((b_tile, n), lambda i: (i, 0)),
            pl.BlockSpec(u0p.shape, lambda i: (0, 0)),
            pl.BlockSpec(g.shape, lambda i: (0, 0, 0)),
            pl.BlockSpec(r.shape, lambda i: (0, 0)),
            pl.BlockSpec(obs.shape, lambda i: (0, 0)),
        ],
        out_specs=pl.BlockSpec((b_tile, OUT_PAD), lambda i: (i, 0)),
        compiler_params=pltpu.CompilerParams(
            dimension_semantics=("parallel",)),
    )(x, u0p, g, r, obs)
    return out[:, :len(meas_spec)]


# ---------------------------------- main ---------------------------------- #
if __name__ == "__main__":
    key = jax.random.PRNGKey(0)
    kx, kw = jax.random.split(key)
    x = jax.random.uniform(kx, (BATCH, NUM_QUBITS), dtype=jnp.float32,
                           minval=-jnp.pi, maxval=jnp.pi)
    # deterministic synthetic weights for qml.StronglyEntanglingLayers
    weights = jax.random.uniform(kw, (NBLOCKS, NUM_LAYERS, NUM_QUBITS, 3),
                                 dtype=jnp.float32, minval=0.0,
                                 maxval=2.0 * np.pi)

    w_np = np.asarray(weights, dtype=np.float64)
    u0p, g, r, obs, blocks = build_kernel_constants(w_np, NUM_QUBITS, MEASUREMENTS)
    obs_dense = build_observables(MEASUREMENTS, NUM_QUBITS)     # reference only

    out = quantum_mlp_forward(x, jnp.asarray(u0p), jnp.asarray(g), jnp.asarray(r),
                              jnp.asarray(obs), MEASUREMENTS, NBLOCKS - 1)
    out = jax.block_until_ready(out)

    # float64 numpy reference (full statevector simulation)
    x_np = np.asarray(x, dtype=np.float64)
    ref = np.zeros((BATCH, NMEAS))
    for b in range(BATCH):
        psi = np.zeros(DIM, dtype=np.complex128)
        psi[0] = 1.0
        for blk in range(NBLOCKS):
            emb = _kron_list([_ry(x_np[b, q]) for q in range(NUM_QUBITS)])
            psi = blocks[blk] @ (emb @ psi)
        for midx in range(NMEAS):
            ref[b, midx] = np.real(np.conj(psi) @ (obs_dense[midx] @ psi))

    assert out.shape == (BATCH, NMEAS)
    assert np.allclose(np.asarray(out), ref, atol=2e-3), (np.asarray(out), ref)
    print("KERNEL_OK")
</pallas_src>

<mosaic_0001>
module attributes {stable_mosaic.version = 11 : i64} {
  func.func @quantum_mlp_kernel(%arg0: i32, %arg1: memref<8x4xf32, #tpu.memory_space<vmem>>, %arg2: memref<32x32xf32, #tpu.memory_space<vmem>>, %arg3: memref<1x32x512xf32, #tpu.memory_space<vmem>>, %arg4: memref<512x32xf32, #tpu.memory_space<vmem>>, %arg5: memref<32x64xf32, #tpu.memory_space<vmem>>, %arg6: memref<8x128xf32, #tpu.memory_space<vmem>>) attributes {dimension_semantics = [#tpu.dimension_semantics<parallel>], iteration_bounds = array<i64: 1>, scalar_prefetch = 0 : i64, scratch_operands = 0 : i64, tpu.core_type = #tpu.core_type<tc>, window_params = [{transform_indices = @transform_0, window_bounds = array<i64: 8, 4>}, {pipeline_mode = #tpu.pipeline_mode<synchronous>, transform_indices = @transform_1, window_bounds = array<i64: 32, 32>}, {pipeline_mode = #tpu.pipeline_mode<synchronous>, transform_indices = @transform_2, window_bounds = array<i64: 1, 32, 512>}, {pipeline_mode = #tpu.pipeline_mode<synchronous>, transform_indices = @transform_3, window_bounds = array<i64: 512, 32>}, {pipeline_mode = #tpu.pipeline_mode<synchronous>, transform_indices = @transform_4, window_bounds = array<i64: 32, 64>}, {transform_indices = @transform_5, window_bounds = array<i64: 8, 128>}]} {
    %c0 = arith.constant 0 : index
    %c0_0 = arith.constant 0 : index
    %0 = vector.load %arg1[%c0, %c0_0] : memref<8x4xf32, #tpu.memory_space<vmem>>, vector<8x4xf32>
    %cst = arith.constant 5.000000e-01 : f32
    %1 = vector.broadcast %cst : f32 to vector<8x4xf32>
    %2 = arith.mulf %1, %0 : vector<8x4xf32>
    %3 = math.cos %2 : vector<8x4xf32>
    %cst_1 = arith.constant 5.000000e-01 : f32
    %4 = vector.broadcast %cst_1 : f32 to vector<8x4xf32>
    %5 = arith.mulf %4, %0 : vector<8x4xf32>
    %6 = math.sin %5 : vector<8x4xf32>
    %7 = tpu.iota {dimensions = array<i32: 1>} : vector<8x32xi32>
    %c8_i32 = arith.constant 8 : i32
    %8 = vector.broadcast %c8_i32 : i32 to vector<8x32xi32>
    %9 = arith.andi %7, %8 : vector<8x32xi32>
    %c0_i32 = arith.constant 0 : i32
    %10 = vector.broadcast %c0_i32 : i32 to vector<8x32xi32>
    %11 = arith.cmpi ne, %9, %10 : vector<8x32xi32>
    %12 = vector.extract_strided_slice %6 {offsets = [0, 0], sizes = [8, 1], strides = [1, 1]} : vector<8x4xf32> to vector<8x1xf32>
    %13 = vector.shape_cast %12 : vector<8x1xf32> to vector<8x1xf32>
    %14 = vector.broadcast %13 : vector<8x1xf32> to vector<8x32xf32>
    %15 = vector.extract_strided_slice %3 {offsets = [0, 0], sizes = [8, 1], strides = [1, 1]} : vector<8x4xf32> to vector<8x1xf32>
    %16 = vector.shape_cast %15 : vector<8x1xf32> to vector<8x1xf32>
    %17 = vector.broadcast %16 : vector<8x1xf32> to vector<8x32xf32>
    %18 = arith.select %11, %14, %17 : vector<8x32xi1>, vector<8x32xf32>
    %c4_i32 = arith.constant 4 : i32
    %19 = vector.broadcast %c4_i32 : i32 to vector<8x32xi32>
    %20 = arith.andi %7, %19 : vector<8x32xi32>
    %c0_i32_2 = arith.constant 0 : i32
    %21 = vector.broadcast %c0_i32_2 : i32 to vector<8x32xi32>
    %22 = arith.cmpi ne, %20, %21 : vector<8x32xi32>
    %23 = vector.extract_strided_slice %6 {offsets = [0, 1], sizes = [8, 1], strides = [1, 1]} : vector<8x4xf32> to vector<8x1xf32>
    %24 = vector.shape_cast %23 : vector<8x1xf32> to vector<8x1xf32>
    %25 = vector.broadcast %24 : vector<8x1xf32> to vector<8x32xf32>
    %26 = vector.extract_strided_slice %3 {offsets = [0, 1], sizes = [8, 1], strides = [1, 1]} : vector<8x4xf32> to vector<8x1xf32>
    %27 = vector.shape_cast %26 : vector<8x1xf32> to vector<8x1xf32>
    %28 = vector.broadcast %27 : vector<8x1xf32> to vector<8x32xf32>
    %29 = arith.select %22, %25, %28 : vector<8x32xi1>, vector<8x32xf32>
    %30 = arith.mulf %18, %29 : vector<8x32xf32>
    %c2_i32 = arith.constant 2 : i32
    %31 = vector.broadcast %c2_i32 : i32 to vector<8x32xi32>
    %32 = arith.andi %7, %31 : vector<8x32xi32>
    %c0_i32_3 = arith.constant 0 : i32
    %33 = vector.broadcast %c0_i32_3 : i32 to vector<8x32xi32>
    %34 = arith.cmpi ne, %32, %33 : vector<8x32xi32>
    %35 = vector.extract_strided_slice %6 {offsets = [0, 2], sizes = [8, 1], strides = [1, 1]} : vector<8x4xf32> to vector<8x1xf32>
    %36 = vector.shape_cast %35 : vector<8x1xf32> to vector<8x1xf32>
    %37 = vector.broadcast %36 : vector<8x1xf32> to vector<8x32xf32>
    %38 = vector.extract_strided_slice %3 {offsets = [0, 2], sizes = [8, 1], strides = [1, 1]} : vector<8x4xf32> to vector<8x1xf32>
    %39 = vector.shape_cast %38 : vector<8x1xf32> to vector<8x1xf32>
    %40 = vector.broadcast %39 : vector<8x1xf32> to vector<8x32xf32>
    %41 = arith.select %34, %37, %40 : vector<8x32xi1>, vector<8x32xf32>
    %42 = arith.mulf %30, %41 : vector<8x32xf32>
    %c1_i32 = arith.constant 1 : i32
    %43 = vector.broadcast %c1_i32 : i32 to vector<8x32xi32>
    %44 = arith.andi %7, %43 : vector<8x32xi32>
    %c0_i32_4 = arith.constant 0 : i32
    %45 = vector.broadcast %c0_i32_4 : i32 to vector<8x32xi32>
    %46 = arith.cmpi ne, %44, %45 : vector<8x32xi32>
    %47 = vector.extract_strided_slice %6 {offsets = [0, 3], sizes = [8, 1], strides = [1, 1]} : vector<8x4xf32> to vector<8x1xf32>
    %48 = vector.shape_cast %47 : vector<8x1xf32> to vector<8x1xf32>
    %49 = vector.broadcast %48 : vector<8x1xf32> to vector<8x32xf32>
    %50 = vector.extract_strided_slice %3 {offsets = [0, 3], sizes = [8, 1], strides = [1, 1]} : vector<8x4xf32> to vector<8x1xf32>
    %51 = vector.shape_cast %50 : vector<8x1xf32> to vector<8x1xf32>
    %52 = vector.broadcast %51 : vector<8x1xf32> to vector<8x32xf32>
    %53 = arith.select %46, %49, %52 : vector<8x32xi1>, vector<8x32xf32>
    %54 = arith.mulf %42, %53 : vector<8x32xf32>
    %c16_i32 = arith.constant 16 : i32
    %55 = vector.broadcast %c16_i32 : i32 to vector<8x32xi32>
    %56 = arith.cmpi slt, %7, %55 : vector<8x32xi32>
    %cst_5 = arith.constant 0.000000e+00 : f32
    %57 = vector.broadcast %cst_5 : f32 to vector<8x32xf32>
    %58 = arith.select %56, %54, %57 : vector<8x32xi1>, vector<8x32xf32>
    %c0_6 = arith.constant 0 : index
    %c0_7 = arith.constant 0 : index
    %59 = vector.load %arg2[%c0_6, %c0_7] : memref<32x32xf32, #tpu.memory_space<vmem>>, vector<32x32xf32>
    %cst_8 = arith.constant dense<0.000000e+00> : vector<8x32xf32>
    %60 = tpu.matmul %58, %59, %cst_8 {dimension_numbers = #tpu.dot_dimension_numbers<[1], [0], [0], [1], [0, 0, 1, 1], [], []>, precision = #tpu.contract_precision<fp32>} : vector<8x32xf32>, vector<32x32xf32>, vector<8x32xf32> -> vector<8x32xf32>
    %61 = tpu.iota {dimensions = array<i32: 1>} : vector<8x512xi32>
    %c256_i32 = arith.constant 256 : i32
    %62 = vector.broadcast %c256_i32 : i32 to vector<8x512xi32>
    %63 = arith.andi %61, %62 : vector<8x512xi32>
    %c0_i32_9 = arith.constant 0 : i32
    %64 = vector.broadcast %c0_i32_9 : i32 to vector<8x512xi32>
    %65 = arith.cmpi ne, %63, %64 : vector<8x512xi32>
    %66 = vector.extract_strided_slice %6 {offsets = [0, 0], sizes = [8, 1], strides = [1, 1]} : vector<8x4xf32> to vector<8x1xf32>
    %67 = vector.shape_cast %66 : vector<8x1xf32> to vector<8x1xf32>
    %68 = vector.broadcast %67 : vector<8x1xf32> to vector<8x512xf32>
    %69 = vector.extract_strided_slice %3 {offsets = [0, 0], sizes = [8, 1], strides = [1, 1]} : vector<8x4xf32> to vector<8x1xf32>
    %70 = vector.shape_cast %69 : vector<8x1xf32> to vector<8x1xf32>
    %71 = vector.broadcast %70 : vector<8x1xf32> to vector<8x512xf32>
    %72 = arith.select %65, %68, %71 : vector<8x512xi1>, vector<8x512xf32>
    %c128_i32 = arith.constant 128 : i32
    %73 = vector.broadcast %c128_i32 : i32 to vector<8x512xi32>
    %74 = arith.andi %61, %73 : vector<8x512xi32>
    %c0_i32_10 = arith.constant 0 : i32
    %75 = vector.broadcast %c0_i32_10 : i32 to vector<8x512xi32>
    %76 = arith.cmpi ne, %74, %75 : vector<8x512xi32>
    %77 = vector.extract_strided_slice %6 {offsets = [0, 1], sizes = [8, 1], strides = [1, 1]} : vector<8x4xf32> to vector<8x1xf32>
    %78 = vector.shape_cast %77 : vector<8x1xf32> to vector<8x1xf32>
    %79 = vector.broadcast %78 : vector<8x1xf32> to vector<8x512xf32>
    %80 = vector.extract_strided_slice %3 {offsets = [0, 1], sizes = [8, 1], strides = [1, 1]} : vector<8x4xf32> to vector<8x1xf32>
    %81 = vector.shape_cast %80 : vector<8x1xf32> to vector<8x1xf32>
    %82 = vector.broadcast %81 : vector<8x1xf32> to vector<8x512xf32>
    %83 = arith.select %76, %79, %82 : vector<8x512xi1>, vector<8x512xf32>
    %84 = arith.mulf %72, %83 : vector<8x512xf32>
    %c64_i32 = arith.constant 64 : i32
    %85 = vector.broadcast %c64_i32 : i32 to vector<8x512xi32>
    %86 = arith.andi %61, %85 : vector<8x512xi32>
    %c0_i32_11 = arith.constant 0 : i32
    %87 = vector.broadcast %c0_i32_11 : i32 to vector<8x512xi32>
    %88 = arith.cmpi ne, %86, %87 : vector<8x512xi32>
    %89 = vector.extract_strided_slice %6 {offsets = [0, 2], sizes = [8, 1], strides = [1, 1]} : vector<8x4xf32> to vector<8x1xf32>
    %90 = vector.shape_cast %89 : vector<8x1xf32> to vector<8x1xf32>
    %91 = vector.broadcast %90 : vector<8x1xf32> to vector<8x512xf32>
    %92 = vector.extract_strided_slice %3 {offsets = [0, 2], sizes = [8, 1], strides = [1, 1]} : vector<8x4xf32> to vector<8x1xf32>
    %93 = vector.shape_cast %92 : vector<8x1xf32> to vector<8x1xf32>
    %94 = vector.broadcast %93 : vector<8x1xf32> to vector<8x512xf32>
    %95 = arith.select %88, %91, %94 : vector<8x512xi1>, vector<8x512xf32>
    %96 = arith.mulf %84, %95 : vector<8x512xf32>
    %c32_i32 = arith.constant 32 : i32
    %97 = vector.broadcast %c32_i32 : i32 to vector<8x512xi32>
    %98 = arith.andi %61, %97 : vector<8x512xi32>
    %c0_i32_12 = arith.constant 0 : i32
    %99 = vector.broadcast %c0_i32_12 : i32 to vector<8x512xi32>
    %100 = arith.cmpi ne, %98, %99 : vector<8x512xi32>
    %101 = vector.extract_strided_slice %6 {offsets = [0, 3], sizes = [8, 1], strides = [1, 1]} : vector<8x4xf32> to vector<8x1xf32>
    %102 = vector.shape_cast %101 : vector<8x1xf32> to vector<8x1xf32>
    %103 = vector.broadcast %102 : vector<8x1xf32> to vector<8x512xf32>
    %104 = vector.extract_strided_slice %3 {offsets = [0, 3], sizes = [8, 1], strides = [1, 1]} : vector<8x4xf32> to vector<8x1xf32>
    %105 = vector.shape_cast %104 : vector<8x1xf32> to vector<8x1xf32>
    %106 = vector.broadcast %105 : vector<8x1xf32> to vector<8x512xf32>
    %107 = arith.select %100, %103, %106 : vector<8x512xi1>, vector<8x512xf32>
    %108 = arith.mulf %96, %107 : vector<8x512xf32>
    %c0_13 = arith.constant 0 : index
    %c0_14 = arith.constant 0 : index
    %c0_15 = arith.constant 0 : index
    %109 = vector.load %arg3[%c0_13, %c0_14, %c0_15] : memref<1x32x512xf32, #tpu.memory_space<vmem>>, vector<1x32x512xf32>
    %110 = vector.shape_cast %109 : vector<1x32x512xf32> to vector<32x512xf32>
    %cst_16 = arith.constant dense<0.000000e+00> : vector<8x512xf32>
    %111 = tpu.matmul %60, %110, %cst_16 {dimension_numbers = #tpu.dot_dimension_numbers<[1], [0], [0], [1], [0, 0, 1, 1], [], []>, precision = #tpu.contract_precision<fp32>} : vector<8x32xf32>, vector<32x512xf32>, vector<8x512xf32> -> vector<8x512xf32>
    %112 = arith.mulf %108, %111 : vector<8x512xf32>
    %c0_17 = arith.constant 0 : index
    %c0_18 = arith.constant 0 : index
    %113 = vector.load %arg4[%c0_17, %c0_18] : memref<512x32xf32, #tpu.memory_space<vmem>>, vector<512x32xf32>
    %cst_19 = arith.constant dense<0.000000e+00> : vector<8x32xf32>
    %114 = tpu.matmul %112, %113, %cst_19 {dimension_numbers = #tpu.dot_dimension_numbers<[1], [0], [0], [1], [0, 0, 1, 1], [], []>, precision = #tpu.contract_precision<fp32>} : vector<8x512xf32>, vector<512x32xf32>, vector<8x32xf32> -> vector<8x32xf32>
    %115 = tpu.iota {dimensions = array<i32: 1>} : vector<8x128xi32>
    %cst_20 = arith.constant 0.000000e+00 : f32
    %116 = vector.broadcast %cst_20 : f32 to vector<8x128xf32>
    %c0_21 = arith.constant 0 : index
    %c0_22 = arith.constant 0 : index
    %117 = vector.load %arg5[%c0_21, %c0_22] : memref<32x64xf32, #tpu.memory_space<vmem>>, vector<32x64xf32>
    %cst_23 = arith.constant dense<0.000000e+00> : vector<8x64xf32>
    %118 = tpu.matmul %114, %117, %cst_23 {dimension_numbers = #tpu.dot_dimension_numbers<[1], [0], [0], [1], [0, 0, 1, 1], [], []>, precision = #tpu.contract_precision<fp32>} : vector<8x32xf32>, vector<32x64xf32>, vector<8x64xf32> -> vector<8x64xf32>
    %c8_i32_24 = arith.constant 8 : i32
    %119 = vector.broadcast %c8_i32_24 : i32 to vector<8x32xi32>
    %120 = arith.andi %7, %119 : vector<8x32xi32>
    %c0_i32_25 = arith.constant 0 : i32
    %121 = vector.broadcast %c0_i32_25 : i32 to vector<8x32xi32>
    %122 = arith.cmpi ne, %120, %121 : vector<8x32xi32>
    %cst_26 = arith.constant -1.000000e+00 : f32
    %cst_27 = arith.constant 1.000000e+00 : f32
    %123 = vector.broadcast %cst_26 : f32 to vector<8x32xf32>
    %124 = vector.broadcast %cst_27 : f32 to vector<8x32xf32>
    %125 = arith.select %122, %123, %124 : vector<8x32xi1>, vector<8x32xf32>
    %126 = arith.mulf %114, %114 : vector<8x32xf32>
    %127 = arith.mulf %125, %126 : vector<8x32xf32>
    %cst_28 = arith.constant dense<0.000000e+00> : vector<8xf32>
    %128 = vector.multi_reduction <add>, %127, %cst_28 [1] : vector<8x32xf32> to vector<8xf32>
    %129 = vector.shape_cast %128 : vector<8xf32> to vector<8x1xf32>
    %c0_i32_29 = arith.constant 0 : i32
    %130 = vector.broadcast %c0_i32_29 : i32 to vector<8x128xi32>
    %131 = arith.cmpi eq, %115, %130 : vector<8x128xi32>
    %cst_30 = arith.constant 0.000000e+00 : f32
    %132 = vector.shape_cast %129 : vector<8x1xf32> to vector<8x1xf32>
    %133 = vector.broadcast %132 : vector<8x1xf32> to vector<8x128xf32>
    %134 = vector.broadcast %cst_30 : f32 to vector<8x128xf32>
    %135 = arith.select %131, %133, %134 : vector<8x128xi1>, vector<8x128xf32>
    %136 = arith.addf %116, %135 : vector<8x128xf32>
    %137 = vector.extract_strided_slice %118 {offsets = [0, 0], sizes = [8, 32], strides = [1, 1]} : vector<8x64xf32> to vector<8x32xf32>
    %138 = arith.mulf %114, %137 : vector<8x32xf32>
    %cst_31 = arith.constant dense<0.000000e+00> : vector<8xf32>
    %139 = vector.multi_reduction <add>, %138, %cst_31 [1] : vector<8x32xf32> to vector<8xf32>
    %140 = vector.shape_cast %139 : vector<8xf32> to vector<8x1xf32>
    %c1_i32_32 = arith.constant 1 : i32
    %141 = vector.broadcast %c1_i32_32 : i32 to vector<8x128xi32>
    %142 = arith.cmpi eq, %115, %141 : vector<8x128xi32>
    %cst_33 = arith.constant 0.000000e+00 : f32
    %143 = vector.shape_cast %140 : vector<8x1xf32> to vector<8x1xf32>
    %144 = vector.broadcast %143 : vector<8x1xf32> to vector<8x128xf32>
    %145 = vector.broadcast %cst_33 : f32 to vector<8x128xf32>
    %146 = arith.select %142, %144, %145 : vector<8x128xi1>, vector<8x128xf32>
    %147 = arith.addf %136, %146 : vector<8x128xf32>
    %148 = vector.extract_strided_slice %118 {offsets = [0, 32], sizes = [8, 32], strides = [1, 1]} : vector<8x64xf32> to vector<8x32xf32>
    %149 = arith.mulf %114, %148 : vector<8x32xf32>
    %cst_34 = arith.constant dense<0.000000e+00> : vector<8xf32>
    %150 = vector.multi_reduction <add>, %149, %cst_34 [1] : vector<8x32xf32> to vector<8xf32>
    %151 = vector.shape_cast %150 : vector<8xf32> to vector<8x1xf32>
    %c2_i32_35 = arith.constant 2 : i32
    %152 = vector.broadcast %c2_i32_35 : i32 to vector<8x128xi32>
    %153 = arith.cmpi eq, %115, %152 : vector<8x128xi32>
    %cst_36 = arith.constant 0.000000e+00 : f32
    %154 = vector.shape_cast %151 : vector<8x1xf32> to vector<8x1xf32>
    %155 = vector.broadcast %154 : vector<8x1xf32> to vector<8x128xf32>
    %156 = vector.broadcast %cst_36 : f32 to vector<8x128xf32>
    %157 = arith.select %153, %155, %156 : vector<8x128xi1>, vector<8x128xf32>
    %158 = arith.addf %147, %157 : vector<8x128xf32>
    %c0_37 = arith.constant 0 : index
    %c0_38 = arith.constant 0 : index
    %159 = vector.load %arg6[%c0_37, %c0_38] : memref<8x128xf32, #tpu.memory_space<vmem>>, vector<8x128xf32>
    tpu.vector_store %arg6[%c0_37, %c0_38], %158 {strides = array<i32>} : memref<8x128xf32, #tpu.memory_space<vmem>>, vector<8x128xf32>,
    return
  }
  func.func @transform_0(%arg0: i32) -> (i32, i32) {
    %c0_i32 = arith.constant 0 : i32
    %c0_i32_0 = arith.constant 0 : i32
    return %arg0, %c0_i32 : i32, i32
  }
  func.func @transform_1(%arg0: i32) -> (i32, i32) {
    %c0_i32 = arith.constant 0 : i32
    %c0_i32_0 = arith.constant 0 : i32
    %c0_i32_1 = arith.constant 0 : i32
    return %c0_i32, %c0_i32_0 : i32, i32
  }
  func.func @transform_2(%arg0: i32) -> (i32, i32, i32) {
    %c0_i32 = arith.constant 0 : i32
    %c0_i32_0 = arith.constant 0 : i32
    %c0_i32_1 = arith.constant 0 : i32
    %c0_i32_2 = arith.constant 0 : i32
    return %c0_i32, %c0_i32_0, %c0_i32_1 : i32, i32, i32
  }
  func.func @transform_3(%arg0: i32) -> (i32, i32) {
    %c0_i32 = arith.constant 0 : i32
    %c0_i32_0 = arith.constant 0 : i32
    %c0_i32_1 = arith.constant 0 : i32
    return %c0_i32, %c0_i32_0 : i32, i32
  }
  func.func @transform_4(%arg0: i32) -> (i32, i32) {
    %c0_i32 = arith.constant 0 : i32
    %c0_i32_0 = arith.constant 0 : i32
    %c0_i32_1 = arith.constant 0 : i32
    return %c0_i32, %c0_i32_0 : i32, i32
  }
  func.func @transform_5(%arg0: i32) -> (i32, i32) {
    %c0_i32 = arith.constant 0 : i32
    %c0_i32_0 = arith.constant 0 : i32
    return %arg0, %c0_i32 : i32, i32
  }
}

</mosaic_0001>

<bundles_post_ra>
// kernel: tpu_custom_call.1
= control target key start
LH: loop header
LB: loop body
LE: loop exit
PB: predicated region body
PF: predicated region fallthrough
CT: control target
= control target key end

     0   :  { %v4941_v1 = vmov 1   ;;  %v4942_v2 = vmov 0   ;;  %s6961_s0 = inlined_call_operand.vmem [shape: f32[8,4], index: 0, kind: input, shape index: {}]   ;;  %s6962_s1 = inlined_call_operand.vmem [shape: f32[32,32], index: 1, kind: input, shape index: {}]   ;;  %s6963_s2 = inlined_call_operand.vmem [shape: f32[1,32,512], index: 2, kind: input, shape index: {}]   ;;  %s6964_s3 = inlined_call_operand.vmem [shape: f32[512,32], index: 3, kind: input, shape index: {}]   ;;  %s6965_s4 = inlined_call_operand.vmem [shape: f32[32,64], index: 4, kind: input, shape index: {}]   ;;  %s6966_s5 = inlined_call_operand.hbm [shape: f32[8,128], index: 5, kind: output, shape index: {}]  }
   0x1   :  { %v21_v0 = vld [vmem:[%s6961_s0] sm:$0xff]  ;;  %4910 = vset.pattern.permute.xlu1 %v4941_v1  ;;  %4909 = vset.pattern.permute.xlu0 %v4942_v2 }
   0x2   :  { %v4989_v3 = vmul.f32 0.5, %v21_v0 }
   0x4   :  { %v26_v4 = vand.u32 2139095040, %v4989_v3 }
   0x5   :  { %10 = vsyncpa [#allocation3], 0  ;;  %v23_v6 = vand.u32 2147483647, %v4989_v3  ;;  %v4943_v15 = vmov 683565275   ;;  %vm115_vm15 = vweird.f32 %v4989_v3 }
   0x6   :  { %v27_v5 = vshrl.u32 %v26_v4, 23  ;;  %v4944_v17 = vmov 2475754826   ;;  %v4945_v19 = vmov 2131351028   ;;  %vm25_vm7 = vcmp.lt.s32.totalorder %v4989_v3, 0 }
   0x7   :  { %v30_v9 = vand.u32 8388607, %v23_v6  ;;  %v4946_v21 = vmov 2102212464   ;;  %v4947_v23 = vmov 920167782  }
   0x8   :  { %v4270_v7 = vadd.s32 4294967169, %v27_v5  ;;  %v4948_v30 = vmov 1326507024   ;;  %vm24_vm8 = vcmp.le.f32.partialorder %v23_v6, 0.7853982 }
   0x9   :  { %v31_v12 = vor.u32 8388608, %v30_v9 }
   0xa   :  { %v33_v8 = vadd.s32 1, %v4270_v7 }
   0xb   :  { %v71_v32 = vshll.u32 %v31_v12, 8 }
   0xc   :  { %vm34_vm0 = vcmp.gt.s32.totalorder %v33_v8, 0 }
   0xd   :  { %v35_v10 = vsel %vm34_vm0, %v33_v8, 0  ;;  %vm4951_vm0 = vmmov 0  }
   0xe   :  { %v37_v11 = vand.u32 31, %v35_v10  ;;  %v36_v13 = vshrl.u32 %v35_v10, 5 }
  0x10   :  { %v38_v14 = vsub.s32 32, %v37_v11  ;;  %v40_v16 = vshll.u32 %v4943_v15, %v37_v11  ;;  %v43_v18 = vshll.u32 %v4944_v17, %v37_v11  ;;  %v46_v20 = vshll.u32 %v4945_v19, %v37_v11 }
  0x11   :  { %v49_v22 = vshll.u32 %v4946_v21, %v37_v11  ;;  %v52_v24 = vshll.u32 %v4947_v23, %v37_v11  ;;  %vm55_vm1 = vcmp.lt.s32.totalorder %v36_v13, 1  ;;  %vm58_vm2 = vcmp.lt.s32.totalorder %v36_v13, 4 }
  0x12   :  { %v39_v25 = vshrl.u32 %v4943_v15, %v38_v14  ;;  %v41_v26 = vshrl.u32 %v4944_v17, %v38_v14  ;;  %v44_v27 = vshrl.u32 %v4945_v19, %v38_v14  ;;  %v47_v28 = vshrl.u32 %v4946_v21, %v38_v14 }
  0x13   :  { %v50_v29 = vshrl.u32 %v4947_v23, %v38_v14  ;;  %v53_v31 = vshrl.u32 %v4948_v30, %v38_v14  ;;  %vm56_vm3 = vcmp.lt.s32.totalorder %v36_v13, 2  ;;  %vm57_vm4 = vcmp.lt.s32.totalorder %v36_v13, 3 }
  0x14   :  { %v42_v33 = vor.u32 %v41_v26, %v40_v16  ;;  %v45_v34 = vor.u32 %v44_v27, %v43_v18  ;;  %v48_v35 = vor.u32 %v47_v28, %v46_v20 }
  0x15   :  { %v51_v36 = vor.u32 %v50_v29, %v49_v22  ;;  %v54_v37 = vor.u32 %v53_v31, %v52_v24 }
  0x16   :  { %v59_v38 = vsel %vm55_vm1, %v39_v25, %v42_v33  ;;  %v60_v39 = vsel %vm58_vm2, %v48_v35, 2102212464  ;;  %v63_v40 = vsel %vm55_vm1, %v42_v33, %v45_v34  ;;  %v67_v41 = vsel %vm55_vm1, %v45_v34, %v48_v35 }
  0x17   :  { %v61_v42 = vsel %vm57_vm4, %v45_v34, %v60_v39  ;;  %v64_v43 = vsel %vm58_vm2, %v51_v36, 920167782  ;;  %v68_v44 = vsel %vm58_vm2, %v54_v37, 1326507024 }
  0x18   :  { %v65_v45 = vsel %vm57_vm4, %v48_v35, %v64_v43  ;;  %v69_v46 = vsel %vm57_vm4, %v51_v36, %v68_v44  ;;  %v62_v47 = vsel %vm56_vm3, %v59_v38, %v61_v42  ;;  %v286_v36 = vld [vmem:[%s6962_s1 + $0x18] sm:$0xff] }
  0x19   :  { %v66_v48 = vsel %vm56_vm3, %v63_v40, %v65_v45  ;;  %v70_v49 = vsel %vm56_vm3, %v67_v41, %v69_v46  ;;  %v78_v54 = vmul.u32 %v71_v32, %v62_v47  ;;  %v5013_v37 = vand.u32 4294901760, %v286_v36  ;;  %v284_v41 = vld [vmem:[%s6962_s1 + $0x8] sm:$0xff]  ;;  %v283_v45 = vld [vmem:[%s6962_s1] sm:$0xff] }
  0x1a   :  { %v4995_v50 = vmul.u32.u64.low %v71_v32, %v70_v49  ;;  %v4996_v51 = vmul.u32.u64.high %v71_v32, %v70_v49, %v4995_v50  ;;  %v4998_v52 = vmul.u32.u64.low %v71_v32, %v66_v48  ;;  %v4999_v53 = vmul.u32.u64.high %v71_v32, %v66_v48, %v4998_v52 }
  0x1b   :  { %v5019_v39 = vsub.f32 %v286_v36, %v5013_v37  ;;  %v5030_v44 = vand.u32 4294901760, %v284_v41  ;;  %v6970_v48 = vmov 0.0   ;;  %v5043_v50 = vand.u32 4294901760, %v283_v45 }
  0x1c   :  { %vm80_vm5 = vc.u32 %v4996_v51, %v4998_v52  ;;  %v81_v55 = vadd.s32 1, %v4999_v53  ;;  %v79_v2 = vadd.s32 %v4998_v52, %v4996_v51  ;;  %4769 = vmatprep.subr.mxu1 %v6970_v48  ;;  %4758 = vmatprep.subr.mxu0 %v6970_v48  ;;  %v4950_v51 = vmov 2  }
  0x1d   :  { %v397_v42 = vand.u32 4294901760, %v5019_v39  ;;  %v5041_v49 = vsub.f32 %v284_v41, %v5030_v44  ;;  %4759 = vmatpush3.msra.mxu0 %v5013_v37  ;;  %4777 = vmatprep.mubr.msk.f32.mxu1 %vm4951_vm0, %v6970_v48 }
  0x1e   :  { %v82_v56 = vsel %vm80_vm5, %v81_v55, %v4999_v53  ;;  %v5051_v55 = vsub.f32 %v283_v45, %v5043_v50  ;;  %4760 = vmatprep.subr.mxu0 %v6970_v48  ;;  %4766 = vmatprep.mubr.msk.f32.mxu0 %vm4951_vm0, %v6970_v48 }
  0x1f   :  { %v83_v57 = vadd.s32 %v82_v56, %v78_v54  ;;  %v398_v46 = vsub.f32 %v5019_v39, %v397_v42  ;;  %v411_v54 = vand.u32 4294901760, %v5041_v49 }
  0x21   :  { %v84_v58 = vadd.s32 536870912, %v83_v57  ;;  %v399_v52 = vand.u32 4294901760, %v398_v46 }
  0x23   :  { %v85_v59 = vshrl.u32 %v84_v58, 30  ;;  %4770 = vmatpush3.msra.mxu1 %v399_v52  ;;  %v418_v58 = vand.u32 4294901760, %v5051_v55 }
  0x24   :  { %4771 = vmatprep.subr.mxu1 %v6970_v48 }
  0x25   :  { %v86_v60 = vshll.u32 %v85_v59, 30  ;;  %v109_v17 = vsub.s32 4, %v85_v59 }
  0x27   :  { %v87_v61 = vsub.s32 %v83_v57, %v86_v60  ;;  %v110_v20 = vsel %vm25_vm7, %v109_v17, %v85_v59  ;;  %v412_v57 = vsub.f32 %v5041_v49, %v411_v54  ;;  %v4952_v59 = vmov 3  }
  0x28   :  { %v112_v22 = vsel %vm24_vm8, 0, %v110_v20 }
  0x29   :  { %v89_v62 = vsub.s32 0, %v87_v61  ;;  %v219_v23 = vadd.s32 3, %v112_v22  ;;  %v116_v25 = vand.u32 3, %v112_v22  ;;  %v413_v60 = vand.u32 4294901760, %v412_v57 }
  0x2b   :  { %v4271_v63 = vmin.u32 %v89_v62, %v87_v61  ;;  %v220_v24 = vand.u32 3, %v219_v23  ;;  %vm121_vm10 = vcmp.eq.s32.totalorder %v116_v25, 2  ;;  %vm118_vm12 = vcmp.eq.s32.totalorder %v116_v25, 0 }
  0x2c   :  { %vm117_vm14 = vcmp.lt.s32.totalorder %v116_v25, 2 }
  0x2d   :  { %v91_v0 = vclz %v4271_v63  ;;  %vm225_vm9 = vcmp.eq.s32.totalorder %v220_v24, 2  ;;  %vm222_vm11 = vcmp.eq.s32.totalorder %v220_v24, 0  ;;  %vm221_vm13 = vcmp.lt.s32.totalorder %v220_v24, 2 }
  0x2e   :  { %v230_v63 = vlaneseq }
  0x2f   :  { %v4272_v1 = vadd.s32 4294967294, %v91_v0 }
  0x30   :  { %v5076_v0 = vand.u32 127, %v230_v63 }
  0x31   :  { %vm4273_vm6 = vcmp.lt.s32.totalorder %v4272_v1, 0 }
  0x32   :  { %v94_v4 = vsel %vm4273_vm6, 0, %v4272_v1  ;;  %7126 = vst [vmem:[#allocation5_spill] sm:$0xff] %v5076_v0  ;;  %v5079_v1 = vadd.s32 128, %v5076_v0 }
  0x33   :  { %v95_v5 = vsub.s32 32, %v94_v4  ;;  %v96_v7 = vshll.u32 %v87_v61, %v94_v4  ;;  %v99_v8 = vsub.s32 4294967266, %v94_v4  ;;  %v419_v61 = vsub.f32 %v5051_v55, %v418_v58 }
  0x35   :  { %v97_v9 = vshrl.u32 %v79_v2, %v95_v5  ;;  %v100_v10 = vadd.s32 127, %v99_v8  ;;  %v420_v62 = vand.u32 4294901760, %v419_v61  ;;  %v5082_v2 = vadd.s32 256, %v5076_v0 }
  0x37   :  { %v98_v11 = vor.u32 %v97_v9, %v96_v7  ;;  %v101_v12 = vshll.u32 %v100_v10, 23  ;;  %7127 = vst [vmem:[#allocation6_spill] sm:$0xff] %v5082_v2  ;;  %v5085_v7 = vadd.s32 384, %v5076_v0  ;;  %v245_v9 = vand.u32 4, %v5076_v0 }
  0x38   :  { %v232_v10 = vand.u32 8, %v5076_v0 }
  0x39   :  { %v102_v13 = vor.u32 4788187, %v101_v12  ;;  %v105_v14 = vcvt.s32.f32 %v98_v11  ;;  %7128 = vst [vmem:[#allocation7_spill] sm:$0xff] %v5085_v7  ;;  %v807_v11 = vand.u32 64, %v5076_v0  ;;  %v808_v12 = vand.u32 64, %v5079_v1 }
  0x3a   :  { %v810_v17 = vand.u32 64, %v5085_v7  ;;  %vm5094_vm1 = vcmp.ne.s32.totalorder %v245_v9, 0  ;;  %vm5098_vm2 = vcmp.ne.s32.totalorder %v232_v10, 0 }
  0x3b   :  { %v103_v15 = vand.u32 2147483647, %v102_v13  ;;  %v809_v13 = vand.u32 64, %v5082_v2  ;;  %vm811_vm3 = vcmp.ne.s32.totalorder %v807_v11, 0  ;;  %vm812_vm4 = vcmp.ne.s32.totalorder %v808_v12, 0  ;;  %v840_v12 = vld [vmem:[%s6963_s2 + $0x8] sm:$0xff] }
  0x3d   :  { %v106_v16 = vmul.f32 %v105_v14, %v103_v15  ;;  %vm5102_vm5 = vcmp.ne.s32.totalorder %v809_v13, 0 }
  0x3f   :  { %v107_v18 = vxor.u32 2147483648, %v106_v16 }
  0x41   :  { %v108_v19 = vsel %vm25_vm7, %v107_v18, %v106_v16  ;;  %v257_v16 = vand.u32 2, %v5076_v0  ;;  %vm5110_vm7 = vcmp.ne.s32.totalorder %v810_v17, 0  ;;  %v839_v17 = vld [vmem:[%s6963_s2] sm:$0xff] }
  0x42   :  { %v111_v21 = vsel %vm24_vm8, %v4989_v3, %v108_v19  ;;  %v285_v3 = vld [vmem:[%s6962_s1 + $0x10] sm:$0xff]  ;;  %s4955_s1 = smov [#allocation2]  }
  0x43   :  { %4915 = vcosq.f32 %v111_v21  ;;  %v5021_v40 = vand.u32 4294901760, %v285_v3  ;;  %vm5106_vm6 = vcmp.ne.s32.totalorder %v257_v16, 0  ;;  %v5243_v16 = vand.u32 4294901760, %v840_v12  ;;  %s4262_s27 = sshll.u32 %s4955_s1, 4  ;;  %s4263_s27 = int_to_ptr.vmem [resolvable:$true] %s4262_s27 }
  0x44   :  { %4917 = vsinq.f32 %v111_v21  ;;  %v7131_v21 = vmov 0  ;;  %s4919_s28 = scalar_lea.vmem %s4263_s27, 128  ;;  %p4924_p1 = scmp.lt.s32.totalorder %s4263_s27, %s4263_s27 }
  0x45   :  { %v5028_v43 = vsub.f32 %v285_v3, %v5021_v40  ;;  %4761 = vmatpush3.msra.mxu0 %v5021_v40  ;;  %v7132_v21 = vsel %vm5098_vm2, 4294967295, %v7131_v21  ;;  %p4920_p0 = scmp.ne.s32.totalorder %s4263_s27, %s4919_s28  ;;  %p4925_p2 = scmp.lt.s32.totalorder %s4919_s28, %s4919_s28 }
  0x46   :  { %4762 = vmatprep.subr.mxu0 %v6970_v48  ;;  %7133 = vst [vmem:[#allocation8_spill] sm:$0xff] %v7132_v21 }
  0x47   :  { %v404_v47 = vand.u32 4294901760, %v5028_v43  ;;  %4763 = vmatpush3.msra.mxu0 %v5030_v44  ;;  %p4926_p3 = por %p4925_p2, %p4924_p1 }
  0x48   :  { %4764 = vmatprep.subr.mxu0 %v6970_v48 }
  0x49   :  { %v405_v53 = vsub.f32 %v5028_v43, %v404_v47  ;;  %4765 = vmatpush3.msra.mxu0 %v5043_v50  ;;  %p4927_p4 = pnand %p4926_p3, %p4920_p0 }
  0x4a   :  { %4780 = vmatprep.subr.mxu0 %v6970_v48 }
  0x4b   :  { %v406_v56 = vand.u32 4294901760, %v405_v53 }
  0x4d   :  { %4772 = vmatpush3.msra.mxu1 %v406_v56 }
  0x4e   :  { %4773 = vmatprep.subr.mxu1 %v6970_v48 }
  0x4f   :  { %4774 = vmatpush3.msra.mxu1 %v413_v60 }
  0x50   :  { %v4916_v26 = vpop.eup %4915  ;;  %4775 = vmatprep.subr.mxu1 %v6970_v48 }
  0x51   :  { %v4918_v27 = vpop.eup %4917  ;;  %v122_v28 = vxor.u32 2147483648, %v4916_v26  ;;  %4776 = vmatpush3.msra.mxu1 %v420_v62 }
  0x52   :  { %v119_v29 = vxor.u32 2147483648, %v4918_v27  ;;  %4791 = vmatprep.subr.mxu1 %v6970_v48 }
  0x53   :  { %v227_v6 = vsel %vm225_vm9, %v122_v28, %v4918_v27  ;;  %v123_v30 = vsel %vm121_vm10, %v122_v28, %v4918_v27  ;;  %vm281_vm9 = vcmp.lt.s32.totalorder %v5076_v0, 16  ;;  %vm287_vm10 = vcmask 261120  }
  0x54   :  { %v224_v31 = vsel %vm222_vm11, %v4916_v26, %v119_v29  ;;  %v120_v32 = vsel %vm118_vm12, %v4916_v26, %v119_v29  ;;  %v269_v26 = vand.u32 1, %v5076_v0 }
  0x55   :  { %v228_v33 = vsel %vm221_vm13, %v224_v31, %v227_v6  ;;  %v124_v34 = vsel %vm117_vm14, %v120_v32, %v123_v30 }
  0x56   :  { %v229_v35 = vsel %vm115_vm15, nan, %v228_v33  ;;  %v125_v38 = vsel %vm115_vm15, nan, %v124_v34  ;;  %vm270_vm8 = vcmp.ne.s32.totalorder %v269_v26, 0  ;;  %v5264_v26 = vsub.f32 %v840_v12, %v5243_v16 }
  0x57   :  { %248 = vperm.xlu1 %4910, %v229_v35   ;;  %236 = vperm.xlu0 %4909, %v229_v35  }
  0x5b   :  { %252 = vperm.xlu1 %4910, %v125_v38   ;;  %241 = vperm.xlu0 %4909, %v125_v38  }
  0x5f   :  { %4912 = vset.pattern.permute.xlu1 %v4950_v51  ;;  %4911 = vset.pattern.permute.xlu0 %v4950_v51 }
  0x60   :  { %264 = vperm.xlu1 %4912, %v125_v38   ;;  %260 = vperm.xlu0 %4911, %v229_v35  }
  0x64   :  { %4913 = vset.pattern.permute.xlu1 %v4952_v59  ;;  %4914 = vset.pattern.permute.xlu0 %v4952_v59 }
  0x65   :  { %272 = vperm.xlu1 %4913, %v229_v35   ;;  %276 = vperm.xlu0 %4914, %v125_v38  }
  0xd2   :  { %v249_v4 = vpop.permute.xlu1 %248  ;;  %v237_v5 = vpop.permute.xlu0 %236 }
  0xd3   :  { %v806_v8 = vmul.f32 %v249_v4, %v237_v5 }
  0xd6   :  { %v253_v14 = vpop.permute.xlu1 %252  ;;  %v242_v15 = vpop.permute.xlu0 %241 }
  0xd7   :  { %v805_v18 = vmul.f32 %v253_v14, %v237_v5  ;;  %v803_v19 = vmul.f32 %v253_v14, %v242_v15  ;;  %v804_v22 = vmul.f32 %v249_v4, %v242_v15  ;;  %v255_v27 = vsel %vm5094_vm1, %v249_v4, %v253_v14 }
  0xd8   :  { %v244_v28 = vsel %vm5098_vm2, %v237_v5, %v242_v15 }
  0xd9   :  { %v256_v38 = vmul.f32 %v255_v27, %v244_v28 }
  0xdb   :  { %v265_v29 = vpop.permute.xlu1 %264  ;;  %v261_v6 = vpop.permute.xlu0 %260 }
  0xdc   :  { %v815_v30 = vsel %vm811_vm3, %v261_v6, %v265_v29  ;;  %v816_v31 = vsel %vm812_vm4, %v261_v6, %v265_v29  ;;  %v817_v32 = vsel %vm5102_vm5, %v261_v6, %v265_v29  ;;  %v267_v33 = vsel %vm5106_vm6, %v261_v6, %v265_v29 }
  0xdd   :  { %v818_v34 = vsel %vm5110_vm7, %v261_v6, %v265_v29  ;;  %v5125_v35 = vmul.f32 %v815_v30, %v803_v19  ;;  %v5127_v36 = vmul.f32 %v816_v31, %v804_v22  ;;  %v5129_v3 = vmul.f32 %v817_v32, %v805_v18 }
  0xde   :  { %v5131_v41 = vmul.f32 %v818_v34, %v806_v8  ;;  %v268_v45 = vmul.f32 %v267_v33, %v256_v38  ;;  %v843_v8 = vld [vmem:[%s6963_s2 + $0x20] sm:$0xff]  ;;  %v5256_v22 = vand.u32 4294901760, %v839_v17  ;;  %v1004_v32 = vand.u32 4294901760, %v5264_v26 }
  0xdf   :  { %7140 = vst [vmem:[#allocation9_spill] sm:$0xff] %v5129_v3  ;;  %v5230_v11 = vand.u32 4294901760, %v843_v8 }
  0xe0   :  { %7141 = vst [vmem:[#allocation10_spill] sm:$0xff] %v5131_v41  ;;  %v5133_v46 = vpop.permute.xlu1 %272  ;;  %v5135_v51 = vpop.permute.xlu0 %276  ;;  %v5272_v6 = vsub.f32 %v839_v17, %v5256_v22 }
  0xe1   :  { %v279_v52 = vsel %vm270_vm8, %v5133_v46, %v5135_v51  ;;  %v5254_v20 = vsub.f32 %v843_v8, %v5230_v11 }
  0xe2   :  { %v280_v53 = vmul.f32 %v279_v52, %v268_v45  ;;  %v1010_v38 = vand.u32 4294901760, %v5272_v6  ;;  %v1005_v52 = vsub.f32 %v5264_v26, %v1004_v32 }
  0xe3   :  { %v998_v29 = vand.u32 4294901760, %v5254_v20 }
  0xe4   :  { %v282_v56 = vsel %vm281_vm9, %v280_v53, 0.0 }
  0xe5   :  { %v289_v57 = vsel %vm287_vm10, %v282_v56, 0  ;;  %v999_v34 = vsub.f32 %v5254_v20, %v998_v29  ;;  %v1011_v56 = vsub.f32 %v5272_v6, %v1010_v38 }
  0xe6   :  { %v360_v59 = vand.u32 4294901760, %v289_v57 }
  0xe7   :  { %v1000_v53 = vand.u32 4294901760, %v999_v34  ;;  %v850_v34 = vld [vmem:[%s6963_s2 + $0x58] sm:$0xff] }
  0xe8   :  { %v361_v60 = vsub.f32 %v289_v57, %v360_v59  ;;  %4778 = vmatmul.mubr.f32.vlgmr.msra.gmra.mxu1 %v360_v59  ;;  %v1006_v57 = vand.u32 4294901760, %v1005_v52  ;;  %v849_v52 = vld [vmem:[%s6963_s2 + $0x50] sm:$0xff] }
  0xe9   :  { %4792 = vmatpush3.msra.mxu1 %v5013_v37  ;;  %4799 = vmatprep.mubr.msk.f32.mxu1 %vm4951_vm0, %v6970_v48 }
  0xea   :  { %4793 = vmatprep.subr.mxu1 %v6970_v48  ;;  %v362_v61 = vand.u32 4294901760, %v361_v60 }
  0xeb   :  { %4794 = vmatpush3.msra.mxu1 %v5021_v40 }
  0xec   :  { %4795 = vmatprep.subr.mxu1 %v6970_v48  ;;  %v363_v62 = vsub.f32 %v361_v60, %v362_v61 }
  0xed   :  { %4796 = vmatpush3.msra.mxu1 %v5030_v44 }
  0xee   :  { %4797 = vmatprep.subr.mxu1 %v6970_v48  ;;  %v364_v63 = vand.u32 4294901760, %v363_v62 }
  0xef   :  { %4798 = vmatpush3.msra.mxu1 %v5043_v50 }
  0xf0   :  { %4800 = vmatmul.mubr.f32.vlgmr.msra.gmra.mxu1 %v362_v61  ;;  %4813 = vmatprep.subr.mxu1 %v6970_v48 }
  0xf1   :  { %4767 = vmatmul.mubr.f32.vlgmr.msra.gmra.mxu0 %v364_v63  ;;  %4814 = vmatpush3.msra.mxu1 %v5013_v37  ;;  %v852_v37 = vld [vmem:[%s6963_s2 + $0x68] sm:$0xff] }
  0xf2   :  { %4781 = vmatpush3.msra.mxu0 %v5019_v39  ;;  %4815 = vmatprep.subr.mxu1 %v6970_v48  ;;  %v5188_v39 = vand.u32 4294901760, %v852_v37 }
  0xf3   :  { %4782 = vmatprep.subr.mxu0 %v6970_v48  ;;  %4816 = vmatpush3.msra.mxu1 %v5021_v40  ;;  %v851_v40 = vld [vmem:[%s6963_s2 + $0x60] sm:$0xff] }
  0xf4   :  { %4783 = vmatpush3.msra.mxu0 %v5028_v43  ;;  %4817 = vmatprep.subr.mxu1 %v6970_v48  ;;  %v848_v43 = vld [vmem:[%s6963_s2 + $0x48] sm:$0xff] }
  0xf5   :  { %4784 = vmatprep.subr.mxu0 %v6970_v48  ;;  %4818 = vmatpush3.msra.mxu1 %v5030_v44  ;;  %v5199_v44 = vsub.f32 %v852_v37, %v5188_v39 }
  0xf6   :  { %4785 = vmatpush3.msra.mxu0 %v5041_v49  ;;  %4819 = vmatprep.subr.mxu1 %v6970_v48  ;;  %v847_v49 = vld [vmem:[%s6963_s2 + $0x40] sm:$0xff] }
  0xf7   :  { %4786 = vmatprep.subr.mxu0 %v6970_v48  ;;  %4788 = vmatprep.mubr.msk.f32.mxu0 %vm4951_vm0, %v6970_v48 }
  0xf8   :  { %4787 = vmatpush3.msra.mxu0 %v5051_v55  ;;  %4820 = vmatpush3.msra.mxu1 %v5043_v50  ;;  %v844_v55 = vld [vmem:[%s6963_s2 + $0x28] sm:$0xff] }
  0xf9   :  { %4821 = vmatprep.mubr.msk.f32.mxu1 %vm4951_vm0, %v6970_v48  ;;  %4789 = vmatmul.mubr.f32.vlgmr.msra.gmra.mxu0 %v361_v60  ;;  %v5220_v5 = vand.u32 4294901760, %v844_v55 }
  0xfa   :  { %4802 = vmatprep.subr.mxu0 %v6970_v48  ;;  %4822 = vmatmul.mubr.f32.vlgmr.msra.gmra.mxu1 %v360_v59 }
  0xfb   :  { %4803 = vmatpush3.msra.mxu0 %v397_v42  ;;  %4810 = vmatprep.mubr.msk.f32.mxu0 %vm4951_vm0, %v6970_v48  ;;  %v5193_v42 = vand.u32 4294901760, %v851_v40  ;;  %v5241_v15 = vsub.f32 %v844_v55, %v5220_v5 }
  0xfc   :  { %4804 = vmatprep.subr.mxu0 %v6970_v48  ;;  %1046 = vmatprep.mubr.f32.mxu1 %v6970_v48 }
  0xfd   :  { %4805 = vmatpush3.msra.mxu0 %v404_v47  ;;  %v5201_v47 = vand.u32 4294901760, %v848_v43  ;;  %v5208_v50 = vsub.f32 %v851_v40, %v5193_v42  ;;  %v992_v25 = vand.u32 4294901760, %v5241_v15 }
  0xfe   :  { %4806 = vmatprep.subr.mxu0 %v6970_v48 }
  0xff   :  { %4807 = vmatpush3.msra.mxu0 %v411_v54  ;;  %v5210_v54 = vand.u32 4294901760, %v847_v49  ;;  %v5218_v4 = vsub.f32 %v848_v43, %v5201_v47  ;;  %v974_v9 = vand.u32 4294901760, %v5208_v50  ;;  %v993_v31 = vsub.f32 %v5241_v15, %v992_v25 }
 0x100   :  { %4808 = vmatprep.subr.mxu0 %v6970_v48 }
 0x101   :  { %4809 = vmatpush3.msra.mxu0 %v418_v58  ;;  %v968_v58 = vand.u32 4294901760, %v5199_v44  ;;  %v5228_v10 = vsub.f32 %v847_v49, %v5210_v54  ;;  %v980_v14 = vand.u32 4294901760, %v5218_v4  ;;  %v975_v18 = vsub.f32 %v5208_v50, %v974_v9 }
 0x102   :  { %4811 = vmatmul.mubr.f32.vlgmr.msra.gmra.mxu0 %v360_v59  ;;  %883 = vmatprep.subr.mxu0 %v5188_v39  ;;  %v994_v45 = vand.u32 4294901760, %v993_v31  ;;  %v1012_v59 = vand.u32 4294901760, %v1011_v56  ;;  %v853_v31 = vld [vmem:[%s6963_s2 + $0x70] sm:$0xff] }
 0x103   :  { %930 = vmatprep.mubr.f32.mxu0 %v6970_v48  ;;  %885 = vmatpush1.msra.mxu0 %v5193_v42  ;;  %v969_v13 = vsub.f32 %v5199_v44, %v968_v58  ;;  %v986_v19 = vand.u32 4294901760, %v5228_v10  ;;  %v981_v24 = vsub.f32 %v5218_v4, %v980_v14  ;;  %v976_v27 = vand.u32 4294901760, %v975_v18 }
 0x104   :  { %887 = vmatprep.subr.mxu0 %v5201_v47  ;;  %v5312_v56 = vand.u32 4294901760, %v853_v31 }
 0x105   :  { %889 = vmatpush1.msra.mxu0 %v5210_v54  ;;  %v970_v23 = vand.u32 4294901760, %v969_v13  ;;  %v987_v28 = vsub.f32 %v5228_v10, %v986_v19  ;;  %v982_v30 = vand.u32 4294901760, %v981_v24 }
 0x106   :  { %891 = vmatprep.subr.mxu0 %v5220_v5 }
 0x107   :  { %893 = vmatpush1.msra.mxu0 %v5230_v11  ;;  %971 = vmatprep.subr.mxu1 %v970_v23  ;;  %v988_v33 = vand.u32 4294901760, %v987_v28  ;;  %v854_v28 = vld [vmem:[%s6963_s2 + $0x78] sm:$0xff] }
 0x108   :  { %895 = vmatprep.subr.mxu0 %v5243_v16  ;;  %977 = vmatpush1.msra.mxu1 %v976_v27 }
 0x109   :  { %897 = vmatpush1.msra.mxu0 %v5256_v22  ;;  %983 = vmatprep.subr.mxu1 %v982_v30 }
 0x10a   :  { %1080 = vmatprep.subr.mxu0 %v5199_v44  ;;  %989 = vmatpush1.msra.mxu1 %v988_v33 }
 0x10b   :  { %995 = vmatprep.subr.mxu1 %v994_v45  ;;  %v5303_v45 = vand.u32 4294901760, %v854_v28 }
 0x10c   :  { %1001 = vmatpush1.msra.mxu1 %v1000_v53 }
 0x10d   :  { %1007 = vmatprep.subr.mxu1 %v1006_v57  ;;  %v846_v57 = vld [vmem:[%s6963_s2 + $0x38] sm:$0xff] }
 0x10e   :  { %1013 = vmatpush1.msra.mxu1 %v1012_v59  ;;  %v5319_v59 = vand.u32 4294901760, %v850_v34 }
 0x10f   :  { %1168 = vmatprep.subr.mxu1 %v5188_v39 }
 0x1a8   :  { %v457_v60 = vpop.f32.mrf.mxu1 }
 0x1aa   :  { %v4779_v61 = vpop.f32.mrf.mxu1 }
 0x1b0   :  { %v614_v62 = vpop.f32.mrf.mxu1 }
 0x1b1   :  { %v366_v63 = vpop.f32.mrf.mxu0 }
 0x1b2   :  { %v4801_v37 = vpop.f32.mrf.mxu1  ;;  %v458_v55 = vadd.f32 %v457_v60, %v366_v63  ;;  %v845_v60 = vld [vmem:[%s6963_s2 + $0x30] sm:$0xff]  ;;  %v842_v63 = vld [vmem:[%s6963_s2 + $0x18] sm:$0xff] }
 0x1b3   :  { %v4768_v40 = vpop.f32.mrf.mxu0  ;;  %v5335_v37 = vsub.f32 %v854_v28, %v5303_v45 }
 0x1b4   :  { %v5337_v40 = vand.u32 4294901760, %v846_v57 }
 0x1b9   :  { %v537_v43 = vpop.f32.mrf.mxu0 }
 0x1ba   :  { %v772_v49 = vpop.f32.mrf.mxu1  ;;  %v538_v13 = vadd.f32 %v537_v43, %v458_v55  ;;  %v841_v43 = vld [vmem:[%s6963_s2 + $0x10] sm:$0xff]  ;;  %v5346_v55 = vsub.f32 %v853_v31, %v5312_v56 }
 0x1bb   :  { %v4790_v8 = vpop.f32.mrf.mxu0 }
 0x1bc   :  { %v4823_v12 = vpop.f32.mrf.mxu1  ;;  %v615_v17 = vadd.f32 %v614_v62, %v538_v13  ;;  %v5328_v62 = vand.u32 4294901760, %v849_v52  ;;  %v5348_v8 = vand.u32 4294901760, %v845_v60  ;;  %v5354_v13 = vand.u32 4294901760, %v842_v63 }
 0x1bd   :  { %v5352_v12 = vsub.f32 %v850_v34, %v5319_v59  ;;  %v1517_v28 = vand.u32 4294901760, %v5346_v55 }
 0x1be   :  { %v5379_v34 = vsub.f32 %v842_v63, %v5354_v13 }
 0x1bf   :  { %v6968_v31 = vand.u32 4294901760, %v5352_v12 }
 0x1c0   :  { %v1547_v63 = vand.u32 4294901760, %v5379_v34 }
 0x1c2   :  { %v697_v18 = vpop.f32.mrf.mxu0 }
 0x1c3   :  { %v698_v23 = vadd.f32 %v697_v18, %v615_v17  ;;  %v5360_v18 = vsub.f32 %v849_v52, %v5328_v62 }
 0x1c4   :  { %v4812_v24 = vpop.f32.mrf.mxu0 }
 0x1c5   :  { %v773_v27 = vadd.f32 %v772_v49, %v698_v23  ;;  %v5362_v23 = vand.u32 4294901760, %v841_v43  ;;  %v1511_v24 = vand.u32 4294901760, %v5335_v37 }
 0x1c7   :  { %v856_v30 = vsel %vm287_vm10, %v773_v27, 0  ;;  %v5367_v27 = vsub.f32 %v846_v57, %v5337_v40  ;;  %v5385_v52 = vsub.f32 %v841_v43, %v5362_v23 }
 0x1c8   :  { %v5298_v33 = vand.u32 4294901760, %v856_v30 }
 0x1c9   :  { %v1535_v57 = vand.u32 4294901760, %v5367_v27  ;;  %v1553_v43 = vand.u32 4294901760, %v5385_v52 }
 0x1ca   :  { %v5309_v53 = vsub.f32 %v856_v30, %v5298_v33  ;;  %1048 = vmatmul.mubr.f32.vlgmr.msra.gmra.mxu1 %v5298_v33  ;;  %v5373_v30 = vsub.f32 %v845_v60, %v5348_v8 }
 0x1cb   :  { %1170 = vmatpush1.msra.mxu1 %v5193_v42  ;;  %1215 = vmatprep.mubr.f32.mxu1 %v6970_v48 }
 0x1cc   :  { %1172 = vmatprep.subr.mxu1 %v5201_v47  ;;  %v5326_v61 = vand.u32 4294901760, %v5309_v53  ;;  %v6969_v60 = vand.u32 4294901760, %v5373_v30 }
 0x1cd   :  { %1174 = vmatpush1.msra.mxu1 %v5210_v54 }
 0x1ce   :  { %1176 = vmatprep.subr.mxu1 %v5220_v5  ;;  %v934_v49 = vsub.f32 %v5309_v53, %v5326_v61 }
 0x1cf   :  { %1178 = vmatpush1.msra.mxu1 %v5230_v11 }
 0x1d0   :  { %1180 = vmatprep.subr.mxu1 %v5243_v16  ;;  %v5357_v17 = vand.u32 4294901760, %v934_v49  ;;  %v1536_v49 = vsub.f32 %v5367_v27, %v1535_v57 }
 0x1d1   :  { %1182 = vmatpush1.msra.mxu1 %v5256_v22 }
 0x1d2   :  { %1219 = vmatmul.mubr.f32.vlgmr.msra.gmra.mxu1 %v5326_v61  ;;  %1346 = vmatprep.subr.mxu1 %v5188_v39  ;;  %v6967_v39 = vand.u32 4294901760, %v5360_v18 }
 0x1d3   :  { %936 = vmatmul.mubr.f32.vlgmr.msra.gmra.mxu0 %v5357_v17  ;;  %1348 = vmatpush1.msra.mxu1 %v5193_v42  ;;  %v1512_v42 = vsub.f32 %v5335_v37, %v1511_v24 }
 0x1d4   :  { %1083 = vmatpush1.msra.mxu0 %v5208_v50  ;;  %1350 = vmatprep.subr.mxu1 %v5201_v47  ;;  %v1518_v47 = vsub.f32 %v5346_v55, %v1517_v28  ;;  %v7142_v50 = vand.u32 4294901760, %v5352_v12 }
 0x1d5   :  { %1086 = vmatprep.subr.mxu0 %v5218_v4  ;;  %1352 = vmatpush1.msra.mxu1 %v5210_v54  ;;  %v1524_v54 = vsub.f32 %v5352_v12, %v6968_v31  ;;  %v7143_v4 = vand.u32 4294901760, %v5360_v18 }
 0x1d6   :  { %1089 = vmatpush1.msra.mxu0 %v5228_v10  ;;  %1354 = vmatprep.subr.mxu1 %v5220_v5  ;;  %v1530_v5 = vsub.f32 %v5360_v18, %v6967_v39  ;;  %v1542_v39 = vsub.f32 %v5373_v30, %v6969_v60  ;;  %v1537_v60 = vand.u32 4294901760, %v1536_v49  ;;  %v1979_v10 = vld [vmem:[%s6964_s3 + $0xf8] sm:$0xff] }
 0x1d7   :  { %1092 = vmatprep.subr.mxu0 %v5241_v15  ;;  %1356 = vmatpush1.msra.mxu1 %v5230_v11  ;;  %v1513_v11 = vand.u32 4294901760, %v1512_v42  ;;  %v1525_v31 = vand.u32 4294901760, %v1524_v54  ;;  %v1548_v42 = vsub.f32 %v5379_v34, %v1547_v63  ;;  %v1963_v15 = vld [vmem:[%s6964_s3 + $0x78] sm:$0xff] }
 0x1d8   :  { %1095 = vmatpush1.msra.mxu0 %v5254_v20  ;;  %1358 = vmatprep.subr.mxu1 %v5243_v16  ;;  %v1519_v16 = vand.u32 4294901760, %v1518_v47  ;;  %v1554_v47 = vsub.f32 %v5385_v52, %v1553_v43  ;;  %v1543_v54 = vand.u32 4294901760, %v1542_v39  ;;  %v1978_v20 = vld [vmem:[%s6964_s3 + $0xf0] sm:$0xff] }
 0x1d9   :  { %1098 = vmatprep.subr.mxu0 %v5264_v26  ;;  %1134 = vmatprep.mubr.f32.mxu0 %v6970_v48  ;;  %v1549_v44 = vand.u32 4294901760, %v1548_v42  ;;  %v1977_v26 = vld [vmem:[%s6964_s3 + $0xe8] sm:$0xff] }
 0x1da   :  { %1101 = vmatpush1.msra.mxu0 %v5272_v6  ;;  %1360 = vmatpush1.msra.mxu1 %v5256_v22  ;;  %v1531_v22 = vand.u32 4294901760, %v1530_v5  ;;  %v5530_v6 = vand.u32 4294901760, %v1978_v20 }
 0x1db   :  { %1393 = vmatprep.mubr.f32.mxu1 %v6970_v48  ;;  %1137 = vmatmul.mubr.f32.vlgmr.msra.gmra.mxu0 %v5309_v53 }
 0x1dc   :  { %1252 = vmatprep.subr.mxu0 %v968_v58  ;;  %1395 = vmatmul.mubr.f32.vlgmr.msra.gmra.mxu1 %v5298_v33  ;;  %v1555_v58 = vand.u32 4294901760, %v1554_v47 }
 0x1dd   :  { %1514 = vmatprep.subr.mxu1 %v1513_v11  ;;  %1256 = vmatpush1.msra.mxu0 %v974_v9  ;;  %v7144_v9 = vand.u32 4294901760, %v5373_v30 }
 0x1de   :  { %1520 = vmatpush1.msra.mxu1 %v1519_v16  ;;  %1260 = vmatprep.subr.mxu0 %v980_v14  ;;  %v5511_v14 = vand.u32 4294901760, %v1979_v10 }
 0x1df   :  { %1526 = vmatprep.subr.mxu1 %v1525_v31  ;;  %1264 = vmatpush1.msra.mxu0 %v986_v19  ;;  %v5516_v19 = vand.u32 4294901760, %v1963_v15 }
 0x1e0   :  { %1532 = vmatpush1.msra.mxu1 %v1531_v22  ;;  %1268 = vmatprep.subr.mxu0 %v992_v25  ;;  %v1962_v25 = vld [vmem:[%s6964_s3 + $0x70] sm:$0xff] }
 0x1e1   :  { %1538 = vmatprep.subr.mxu1 %v1537_v60  ;;  %1272 = vmatpush1.msra.mxu0 %v998_v29  ;;  %v5528_v29 = vsub.f32 %v1979_v10, %v5511_v14  ;;  %v1958_v22 = vld [vmem:[%s6964_s3 + $0x50] sm:$0xff] }
 0x1e2   :  { %1544 = vmatpush1.msra.mxu1 %v1543_v54  ;;  %1276 = vmatprep.subr.mxu0 %v1004_v32  ;;  %v5532_v32 = vand.u32 4294901760, %v1962_v25  ;;  %v5630_v10 = vand.u32 4294901760, %v1958_v22 }
 0x1e3   :  { %1550 = vmatprep.subr.mxu1 %v1549_v44  ;;  %1280 = vmatpush1.msra.mxu0 %v1010_v38  ;;  %7145 = vst [vmem:[#allocation11_spill] sm:$0xff] %v5528_v29  ;;  %v5534_v38 = vand.u32 4294901760, %v1977_v26 }
 0x1e4   :  { %1313 = vmatprep.mubr.f32.mxu0 %v6970_v48  ;;  %1556 = vmatpush1.msra.mxu1 %v1555_v58 }
 0x1e5   :  { %1589 = vmatprep.mubr.f32.mxu1 %v6970_v48  ;;  %1315 = vmatmul.mubr.f32.vlgmr.msra.gmra.mxu0 %v5298_v33 }
 0x1e6   :  { %1426 = vmatprep.subr.mxu0 %v5303_v45  ;;  %1591 = vmatmul.mubr.f32.vlgmr.msra.gmra.mxu1 %v5298_v33 }
 0x1e7   :  { %1711 = vmatprep.subr.mxu1 %v5303_v45  ;;  %1428 = vmatpush1.msra.mxu0 %v5312_v56 }
 0x1e8   :  { %1713 = vmatpush1.msra.mxu1 %v5312_v56  ;;  %1430 = vmatprep.subr.mxu0 %v5319_v59 }
 0x1e9   :  { %1715 = vmatprep.subr.mxu1 %v5319_v59  ;;  %1432 = vmatpush1.msra.mxu0 %v5328_v62 }
 0x1ea   :  { %1717 = vmatpush1.msra.mxu1 %v5328_v62  ;;  %1434 = vmatprep.subr.mxu0 %v5337_v40 }
 0x1eb   :  { %1719 = vmatprep.subr.mxu1 %v5337_v40  ;;  %1436 = vmatpush1.msra.mxu0 %v5348_v8 }
 0x1ec   :  { %1721 = vmatpush1.msra.mxu1 %v5348_v8  ;;  %1438 = vmatprep.subr.mxu0 %v5354_v13 }
 0x1ed   :  { %1723 = vmatprep.subr.mxu1 %v5354_v13  ;;  %1440 = vmatpush1.msra.mxu0 %v5362_v23 }
 0x1ee   :  { %1473 = vmatprep.mubr.f32.mxu0 %v6970_v48  ;;  %1725 = vmatpush1.msra.mxu1 %v5362_v23 }
 0x1ef   :  { %1758 = vmatprep.mubr.f32.mxu1 %v6970_v48  ;;  %1479 = vmatmul.mubr.f32.vlgmr.msra.gmra.mxu0 %v5357_v17  ;;  %v1960_v17 = vld [vmem:[%s6964_s3 + $0x60] sm:$0xff] }
 0x1f0   :  { %1623 = vmatprep.subr.mxu0 %v5335_v37  ;;  %1762 = vmatmul.mubr.f32.vlgmr.msra.gmra.mxu1 %v5326_v61  ;;  %v1961_v61 = vld [vmem:[%s6964_s3 + $0x68] sm:$0xff] }
 0x1f1   :  { %1889 = vmatprep.subr.mxu1 %v5303_v45  ;;  %1626 = vmatpush1.msra.mxu0 %v5346_v55  ;;  %v6985_v45 = vand.u32 4294901760, %v5528_v29  ;;  %v5556_v37 = vand.u32 4294901760, %v1961_v61 }
 0x1f2   :  { %1891 = vmatpush1.msra.mxu1 %v5312_v56  ;;  %1629 = vmatprep.subr.mxu0 %v5352_v12  ;;  %v5546_v56 = vsub.f32 %v1962_v25, %v5532_v32 }
 0x1f3   :  { %1893 = vmatprep.subr.mxu1 %v5319_v59  ;;  %1632 = vmatpush1.msra.mxu0 %v5360_v18  ;;  %v5549_v59 = vsub.f32 %v1977_v26, %v5534_v38  ;;  %v2240_v55 = vsub.f32 %v5528_v29, %v6985_v45 }
 0x1f4   :  { %1895 = vmatpush1.msra.mxu1 %v5328_v62  ;;  %1635 = vmatprep.subr.mxu0 %v5367_v27  ;;  %v6981_v12 = vand.u32 4294901760, %v5546_v56  ;;  %v5580_v27 = vand.u32 4294901760, %v1960_v17 }
 0x1f5   :  { %1897 = vmatprep.subr.mxu1 %v5337_v40  ;;  %1638 = vmatpush1.msra.mxu0 %v5373_v30  ;;  %v1976_v40 = vld [vmem:[%s6964_s3 + $0xe0] sm:$0xff]  ;;  %v2241_v30 = vand.u32 4294901760, %v2240_v55 }
 0x1f6   :  { %1899 = vmatpush1.msra.mxu1 %v5348_v8  ;;  %1641 = vmatprep.subr.mxu0 %v5379_v34  ;;  %v2135_v34 = vsub.f32 %v5546_v56, %v6981_v12  ;;  %v5603_v5 = vsub.f32 %v1960_v17, %v5580_v27 }
 0x1f7   :  { %1901 = vmatprep.subr.mxu1 %v5354_v13  ;;  %1644 = vmatpush1.msra.mxu0 %v5385_v52  ;;  %v6980_v13 = vand.u32 4294901760, %v5549_v59  ;;  %v1959_v52 = vld [vmem:[%s6964_s3 + $0x58] sm:$0xff] }
 0x1f8   :  { %1677 = vmatprep.mubr.f32.mxu0 %v6970_v48  ;;  %1903 = vmatpush1.msra.mxu1 %v5362_v23  ;;  %v5576_v23 = vsub.f32 %v1961_v61, %v5556_v37  ;;  %v2136_v49 = vand.u32 4294901760, %v2135_v34  ;;  %v6977_v44 = vand.u32 4294901760, %v5603_v5  ;;  %v5620_v58 = vand.u32 4294901760, %v1959_v52 }
 0x1f9   :  { %1936 = vmatprep.mubr.f32.mxu1 %v6970_v48  ;;  %1680 = vmatmul.mubr.f32.vlgmr.msra.gmra.mxu0 %v5309_v53  ;;  %v5543_v53 = vsub.f32 %v1978_v20, %v5530_v6  ;;  %v2254_v39 = vsub.f32 %v5549_v59, %v6980_v13  ;;  %v1957_v20 = vld [vmem:[%s6964_s3 + $0x48] sm:$0xff] }
 0x1fa   :  { %1795 = vmatprep.subr.mxu0 %v1511_v24  ;;  %1938 = vmatmul.mubr.f32.vlgmr.msra.gmra.mxu1 %v5298_v33  ;;  %v5578_v24 = vand.u32 4294901760, %v1976_v40  ;;  %v6979_v60 = vand.u32 4294901760, %v5576_v23  ;;  %v2149_v61 = vsub.f32 %v5603_v5, %v6977_v44 }
 0x1fb   :  { %1799 = vmatpush1.msra.mxu0 %v1517_v28  ;;  %1856 = vmatprep.mubr.f32.mxu0 %v6970_v48  ;;  %v6982_v8 = vand.u32 4294901760, %v5543_v53  ;;  %v1975_v28 = vld [vmem:[%s6964_s3 + $0xd8] sm:$0xff]  ;;  %v2255_v16 = vand.u32 4294901760, %v2254_v39 }
 0x1fc   :  { %1803 = vmatprep.subr.mxu0 %v7142_v50  ;;  %4343 = vmatprep.subr.mxu1 %v2241_v30  ;;  %v5609_v42 = vand.u32 4294901760, %v1975_v28  ;;  %v2142_v47 = vsub.f32 %v5576_v23, %v6979_v60  ;;  %v1973_v50 = vld [vmem:[%s6964_s3 + $0xc8] sm:$0xff]  ;;  %v1972_v30 = vld [vmem:[%s6964_s3 + $0xc0] sm:$0xff]  ;;  %v2150_v39 = vand.u32 4294901760, %v2149_v61 }
 0x1fd   :  { %1807 = vmatpush1.msra.mxu0 %v7143_v4  ;;  %v2247_v31 = vsub.f32 %v5543_v53, %v6982_v8 }
 0x1fe   :  { %1811 = vmatprep.subr.mxu0 %v1535_v57  ;;  %v5626_v4 = vsub.f32 %v1975_v28, %v5609_v42  ;;  %v2143_v25 = vand.u32 4294901760, %v2142_v47 }
 0x1ff   :  { %1815 = vmatpush1.msra.mxu0 %v7144_v9  ;;  %v2248_v11 = vand.u32 4294901760, %v2247_v31  ;;  %v1956_v31 = vld [vmem:[%s6964_s3 + $0x40] sm:$0xff] }
 0x200   :  { %1819 = vmatprep.subr.mxu0 %v1547_v63  ;;  %v5600_v63 = vsub.f32 %v1976_v40, %v5578_v24  ;;  %v5645_v40 = vsub.f32 %v1959_v52, %v5620_v58  ;;  %v6973_v55 = vand.u32 4294901760, %v5626_v4 }
 0x201   :  { %1823 = vmatpush1.msra.mxu0 %v1553_v43  ;;  %v1974_v43 = vld [vmem:[%s6964_s3 + $0xd0] sm:$0xff] }
 0x202   :  { %1858 = vmatmul.mubr.f32.vlgmr.msra.gmra.mxu0 %v5298_v33  ;;  %4308 = vmatprep.subr.mxu0 %v5511_v14  ;;  %v5538_v33 = vsub.f32 %v1963_v15, %v5516_v19  ;;  %v6978_v54 = vand.u32 4294901760, %v5600_v63  ;;  %v5628_v9 = vand.u32 4294901760, %v1974_v43  ;;  %v5632_v15 = vand.u32 4294901760, %v1973_v50 }
 0x203   :  { %4309 = vmatpush3.msra.mxu0 %v5516_v19  ;;  %v6972_v52 = vand.u32 4294901760, %v5645_v40 }
 0x204   :  { %4310 = vmatprep.subr.mxu0 %v5530_v6  ;;  %v6984_v62 = vand.u32 4294901760, %v5538_v33  ;;  %v2261_v26 = vsub.f32 %v5600_v63, %v6978_v54  ;;  %v5650_v17 = vsub.f32 %v1974_v43, %v5628_v9  ;;  %v5656_v28 = vsub.f32 %v1973_v50, %v5632_v15 }
 0x205   :  { %4311 = vmatpush3.msra.mxu0 %v5532_v32  ;;  %v2268_v43 = vsub.f32 %v5626_v4, %v6973_v55  ;;  %v5682_v50 = vand.u32 4294901760, %v1972_v30 }
 0x206   :  { %4312 = vmatprep.subr.mxu0 %v5534_v38  ;;  %v2128_v18 = vsub.f32 %v5538_v33, %v6984_v62  ;;  %v2262_v34 = vand.u32 4294901760, %v2261_v26  ;;  %v1971_v26 = vld [vmem:[%s6964_s3 + $0xb8] sm:$0xff] }
 0x207   :  { %4313 = vmatpush3.msra.mxu0 %v5556_v37  ;;  %v2269_v61 = vand.u32 4294901760, %v2268_v43  ;;  %v5704_v43 = vsub.f32 %v1972_v30, %v5682_v50 }
 0x208   :  { %v2129_v57 = vand.u32 4294901760, %v2128_v18  ;;  %4314 = vmatprep.subr.mxu0 %v5578_v24  ;;  %v5653_v18 = vsub.f32 %v1958_v22, %v5630_v10  ;;  %v2156_v22 = vsub.f32 %v5645_v40, %v6972_v52  ;;  %v1955_v52 = vld [vmem:[%s6964_s3 + $0x38] sm:$0xff] }
 0x209   :  { %4315 = vmatpush3.msra.mxu0 %v5580_v27  ;;  %7147 = vst [vmem:[#allocation13_spill] sm:$0xff] %v5704_v43  ;;  %v6988_v13 = vand.u32 4294901760, %v5704_v43  ;;  %v5727_v8 = vand.u32 4294901760, %v1955_v52 }
 0x20a   :  { %4344 = vmatpush3.msra.mxu1 %v2129_v57  ;;  %4316 = vmatprep.subr.mxu0 %v5609_v42  ;;  %v5666_v57 = vand.u32 4294901760, %v1957_v20  ;;  %v2157_v55 = vand.u32 4294901760, %v2156_v22  ;;  %v1969_v22 = vld [vmem:[%s6964_s3 + $0xa8] sm:$0xff] }
 0x20b   :  { %4345 = vmatprep.subr.mxu1 %v2248_v11  ;;  %4317 = vmatpush3.msra.mxu0 %v5620_v58  ;;  %v6974_v11 = vand.u32 4294901760, %v5650_v17  ;;  %v5749_v62 = vsub.f32 %v1955_v52, %v5727_v8  ;;  %v1952_v52 = vld [vmem:[%s6964_s3 + $0x20] sm:$0xff] }
 0x20c   :  { %4346 = vmatpush3.msra.mxu1 %v2136_v49  ;;  %4318 = vmatprep.subr.mxu0 %v5628_v9  ;;  %v6975_v49 = vand.u32 4294901760, %v5653_v18  ;;  %v5680_v47 = vsub.f32 %v1957_v20, %v5666_v57  ;;  %v5788_v7 = vand.u32 4294901760, %v1952_v52 }
 0x20d   :  { %4347 = vmatprep.subr.mxu1 %v2255_v16  ;;  %4319 = vmatpush3.msra.mxu0 %v5630_v10  ;;  %v6976_v16 = vand.u32 4294901760, %v5656_v28  ;;  %7150 = vst [vmem:[#allocation16_spill] sm:$0xff] %v5749_v62 }
 0x20e   :  { %4348 = vmatpush3.msra.mxu1 %v2143_v25  ;;  %4320 = vmatprep.subr.mxu0 %v5632_v15  ;;  %7146 = vst [vmem:[#allocation12_spill] sm:$0xff] %v5680_v47  ;;  %v5684_v25 = vand.u32 4294901760, %v1956_v31  ;;  %v2163_v20 = vsub.f32 %v5653_v18, %v6975_v49  ;;  %v1970_v49 = vld [vmem:[%s6964_s3 + $0xb0] sm:$0xff]  ;;  %7156 = vst [vmem:[#allocation22_spill] sm:$0xff] %v5788_v7 }
 0x20f   :  { %4349 = vmatprep.subr.mxu1 %v2262_v34  ;;  %4321 = vmatpush3.msra.mxu0 %v5666_v57  ;;  %v2275_v34 = vsub.f32 %v5650_v17, %v6974_v11  ;;  %v2282_v48 = vsub.f32 %v5656_v28, %v6976_v16  ;;  %v1954_v16 = vld [vmem:[%s6964_s3 + $0x30] sm:$0xff] }
 0x210   :  { %4350 = vmatpush3.msra.mxu1 %v2150_v39  ;;  %v6983_v39 = vand.u32 4294901760, %v5680_v47  ;;  %v5707_v11 = vsub.f32 %v1956_v31, %v5684_v25  ;;  %4322 = vmatprep.subr.mxu0 %v5682_v50  ;;  %v2164_v44 = vand.u32 4294901760, %v2163_v20  ;;  %v5719_v31 = vand.u32 4294901760, %v1971_v26 }
 0x211   :  { %4351 = vmatprep.subr.mxu1 %v2269_v61  ;;  %v2276_v30 = vand.u32 4294901760, %v2275_v34  ;;  %v2283_v54 = vand.u32 4294901760, %v2282_v48  ;;  %4323 = vmatpush3.msra.mxu0 %v5684_v25  ;;  %v5732_v48 = vand.u32 4294901760, %v1970_v49  ;;  %v5734_v34 = vand.u32 4294901760, %v1954_v16 }
 0x212   :  { %7148 = vst [vmem:[#allocation14_spill] sm:$0xff] %v5707_v11  ;;  %4352 = vmatpush3.msra.mxu1 %v2157_v55  ;;  %v2170_v60 = vsub.f32 %v5680_v47, %v6983_v39  ;;  %v6987_v12 = vand.u32 4294901760, %v5707_v11  ;;  %v5730_v61 = vsub.f32 %v1971_v26, %v5719_v31  ;;  %v5736_v20 = vand.u32 4294901760, %v1969_v22  ;;  %v1953_v55 = vld [vmem:[%s6964_s3 + $0x28] sm:$0xff]  ;;  %4324 = vmatprep.subr.mxu0 %v5719_v31 }
 0x213   :  { %4353 = vmatprep.subr.mxu1 %v2276_v30  ;;  %v2289_v30 = vsub.f32 %v5704_v43, %v6988_v13  ;;  %4325 = vmatpush3.msra.mxu0 %v5727_v8  ;;  %v5754_v21 = vsub.f32 %v1970_v49, %v5732_v48  ;;  %v6992_v13 = vand.u32 4294901760, %v5749_v62 }
 0x214   :  { %7149 = vst [vmem:[#allocation15_spill] sm:$0xff] %v5730_v61  ;;  %4354 = vmatpush3.msra.mxu1 %v2164_v44  ;;  %v2171_v39 = vand.u32 4294901760, %v2170_v60  ;;  %v2177_v26 = vsub.f32 %v5707_v11, %v6987_v12  ;;  %v6991_v45 = vand.u32 4294901760, %v5730_v61  ;;  %v5757_v60 = vsub.f32 %v1954_v16, %v5734_v34  ;;  %v1968_v12 = vld [vmem:[%s6964_s3 + $0xa0] sm:$0xff]  ;;  %4326 = vmatprep.subr.mxu0 %v5732_v48 }
 0x215   :  { %4355 = vmatprep.subr.mxu1 %v2283_v54  ;;  %7151 = vst [vmem:[#allocation17_spill] sm:$0xff] %v5754_v21  ;;  %v5760_v44 = vsub.f32 %v1969_v22, %v5736_v20  ;;  %v2290_v54 = vand.u32 4294901760, %v2289_v30  ;;  %v5770_v16 = vand.u32 4294901760, %v1953_v55  ;;  %4327 = vmatpush3.msra.mxu0 %v5734_v34  ;;  %v6999_v3 = vand.u32 4294901760, %v5754_v21 }
 0x216   :  { %7152 = vst [vmem:[#allocation18_spill] sm:$0xff] %v5757_v60  ;;  %4356 = vmatpush3.msra.mxu1 %v2171_v39  ;;  %v2178_v49 = vand.u32 4294901760, %v2177_v26  ;;  %v2296_v22 = vsub.f32 %v5730_v61, %v6991_v45  ;;  %v7000_v41 = vand.u32 4294901760, %v5757_v60  ;;  %4328 = vmatprep.subr.mxu0 %v5736_v20  ;;  %v2184_v39 = vsub.f32 %v5749_v62, %v6992_v13  ;;  %v1967_v45 = vld [vmem:[%s6964_s3 + $0x98] sm:$0xff] }
 0x217   :  { %7153 = vst [vmem:[#allocation19_spill] sm:$0xff] %v5760_v44  ;;  %7154 = vst [vmem:[#allocation20_spill] sm:$0xff] %v5770_v16  ;;  %4357 = vmatprep.subr.mxu1 %v2290_v54  ;;  %v5784_v30 = vsub.f32 %v1953_v55, %v5770_v16  ;;  %v5786_v26 = vand.u32 4294901760, %v1968_v12  ;;  %4329 = vmatpush3.msra.mxu0 %v5770_v16  ;;  %v2303_v54 = vsub.f32 %v5754_v21, %v6999_v3  ;;  %v1951_v61 = vld [vmem:[%s6964_s3 + $0x18] sm:$0xff] }
 0x218   :  { %4358 = vmatpush3.msra.mxu1 %v2178_v49  ;;  %v2297_v2 = vand.u32 4294901760, %v2296_v22  ;;  %v2191_v55 = vsub.f32 %v5757_v60, %v7000_v41  ;;  %v7157_v13 = vand.u32 4294901760, %v5760_v44  ;;  %v2185_v11 = vand.u32 4294901760, %v2184_v39  ;;  %v1966_v41 = vld [vmem:[%s6964_s3 + $0x90] sm:$0xff]  ;;  %v1965_v39 = vld [vmem:[%s6964_s3 + $0x88] sm:$0xff] }
 0x219   :  { %7155 = vst [vmem:[#allocation21_spill] sm:$0xff] %v5784_v30  ;;  %v5808_v22 = vsub.f32 %v1968_v12, %v5786_v26  ;;  %v5811_v3 = vsub.f32 %v1952_v52, %v5788_v7  ;;  %4330 = vmatprep.subr.mxu0 %v5786_v26  ;;  %v2304_v12 = vand.u32 4294901760, %v2303_v54  ;;  %v5823_v52 = vand.u32 4294901760, %v1967_v45 }
 0x21a   :  { %v2310_v62 = vsub.f32 %v5760_v44, %v7157_v13  ;;  %v1950_v13 = vld [vmem:[%s6964_s3 + $0x10] sm:$0xff]  ;;  %4359 = vmatprep.subr.mxu1 %v2297_v2  ;;  %v2192_v49 = vand.u32 4294901760, %v2191_v55  ;;  %4331 = vmatpush3.msra.mxu0 %v5788_v7  ;;  %v7161_v60 = vand.u32 4294901760, %v5784_v30  ;;  %v5831_v47 = vand.u32 4294901760, %v1951_v61 }
 0x21b   :  { %7158 = vst [vmem:[#allocation23_spill] sm:$0xff] %v5808_v22  ;;  %7159 = vst [vmem:[#allocation24_spill] sm:$0xff] %v5811_v3  ;;  %4360 = vmatpush3.msra.mxu1 %v2185_v11  ;;  %v7020_v43 = vand.u32 4294901760, %v5808_v22  ;;  %v7019_v16 = vand.u32 4294901760, %v5811_v3  ;;  %v5834_v2 = vsub.f32 %v1967_v45, %v5823_v52  ;;  %v5838_v54 = vand.u32 4294901760, %v1950_v13  ;;  %v1949_v11 = vld [vmem:[%s6964_s3 + $0x8] sm:$0xff]  ;;  %4332 = vmatprep.subr.mxu0 %v5823_v52 }
 0x21c   :  { %v2311_v44 = vand.u32 4294901760, %v2310_v62  ;;  %7160 = vst [vmem:[#allocation25_spill] sm:$0xff] %v5823_v52  ;;  %v2198_v21 = vsub.f32 %v5784_v30, %v7161_v60  ;;  %7162 = vst [vmem:[#allocation26_spill] sm:$0xff] %v5831_v47  ;;  %4361 = vmatprep.subr.mxu1 %v2304_v12  ;;  %v5836_v62 = vand.u32 4294901760, %v1966_v41  ;;  %v5840_v55 = vand.u32 4294901760, %v1965_v39  ;;  %4333 = vmatpush3.msra.mxu0 %v5831_v47 }
 0x21d   :  { %7163 = vst [vmem:[#allocation27_spill] sm:$0xff] %v5834_v2  ;;  %7164 = vst [vmem:[#allocation28_spill] sm:$0xff] %v5838_v54  ;;  %4362 = vmatpush3.msra.mxu1 %v2192_v49  ;;  %v2317_v12 = vsub.f32 %v5808_v22, %v7020_v43  ;;  %v2205_v45 = vsub.f32 %v5811_v3, %v7019_v16  ;;  %v5853_v30 = vsub.f32 %v1951_v61, %v5831_v47  ;;  %v1964_v16 = vld [vmem:[%s6964_s3 + $0x80] sm:$0xff] }
 0x21e   :  { %7165 = vst [vmem:[#allocation29_spill] sm:$0xff] %v5840_v55  ;;  %v2199_v60 = vand.u32 4294901760, %v2198_v21  ;;  %4363 = vmatprep.subr.mxu1 %v2311_v44  ;;  %v7029_v7 = vand.u32 4294901760, %v5834_v2  ;;  %v5858_v52 = vsub.f32 %v1966_v41, %v5836_v62  ;;  %v5861_v21 = vsub.f32 %v1950_v13, %v5838_v54  ;;  %v1948_v61 = vld [vmem:[%s6964_s3] sm:$0xff]  ;;  %4334 = vmatprep.subr.mxu0 %v5836_v62 }
 0x21f   :  { %7166 = vst [vmem:[#allocation30_spill] sm:$0xff] %v5853_v30  ;;  %v5864_v49 = vsub.f32 %v1965_v39, %v5840_v55  ;;  %v2318_v44 = vand.u32 4294901760, %v2317_v12  ;;  %v2206_v41 = vand.u32 4294901760, %v2205_v45  ;;  %v7030_v43 = vand.u32 4294901760, %v5853_v30  ;;  %4335 = vmatpush3.msra.mxu0 %v5838_v54 }
 0x220   :  { %7167 = vst [vmem:[#allocation31_spill] sm:$0xff] %v5858_v52  ;;  %7168 = vst [vmem:[#allocation32_spill] sm:$0xff] %v5861_v21  ;;  %4364 = vmatpush3.msra.mxu1 %v2199_v60  ;;  %v5874_v13 = vand.u32 4294901760, %v1949_v11  ;;  %v2324_v39 = vsub.f32 %v5834_v2, %v7029_v7  ;;  %v7037_v3 = vand.u32 4294901760, %v5858_v52  ;;  %v7041_v22 = vand.u32 4294901760, %v5861_v21  ;;  %4336 = vmatprep.subr.mxu0 %v5840_v55 }
 0x221   :  { %7169 = vst [vmem:[#allocation33_spill] sm:$0xff] %v5864_v49  ;;  %4365 = vmatprep.subr.mxu1 %v2318_v44  ;;  %v2212_v60 = vsub.f32 %v5853_v30, %v7030_v43  ;;  %v5890_v45 = vand.u32 4294901760, %v1964_v16  ;;  %v5892_v54 = vand.u32 4294901760, %v1948_v61  ;;  %v7172_v43 = vand.u32 4294901760, %v5864_v49 }
 0x222   :  { %7170 = vst [vmem:[#allocation34_spill] sm:$0xff] %v5874_v13  ;;  %v5888_v12 = vsub.f32 %v1949_v11, %v5874_v13  ;;  %4337 = vmatpush3.msra.mxu0 %v5874_v13  ;;  %4366 = vmatpush3.msra.mxu1 %v2206_v41  ;;  %v2325_v7 = vand.u32 4294901760, %v2324_v39  ;;  %v2331_v47 = vsub.f32 %v5858_v52, %v7037_v3 }
 0x223   :  { %v2219_v44 = vsub.f32 %v5861_v21, %v7041_v22  ;;  %v2338_v11 = vsub.f32 %v5864_v49, %v7172_v43  ;;  %v2213_v30 = vand.u32 4294901760, %v2212_v60  ;;  %v5906_v55 = vsub.f32 %v1964_v16, %v5890_v45  ;;  %4338 = vmatprep.subr.mxu0 %v5890_v45 }
 0x224   :  { %7171 = vst [vmem:[#allocation35_spill] sm:$0xff] %v5888_v12  ;;  %v7040_v2 = vand.u32 4294901760, %v5888_v12  ;;  %v5909_v41 = vsub.f32 %v1948_v61, %v5892_v54  ;;  %4367 = vmatprep.subr.mxu1 %v2325_v7  ;;  %v2332_v39 = vand.u32 4294901760, %v2331_v47  ;;  %4339 = vmatpush3.msra.mxu0 %v5892_v54 }
 0x225   :  { %7173 = vst [vmem:[#allocation36_spill] sm:$0xff] %v5906_v55  ;;  %v2220_v3 = vand.u32 4294901760, %v2219_v44  ;;  %v2339_v52 = vand.u32 4294901760, %v2338_v11  ;;  %4368 = vmatpush3.msra.mxu1 %v2213_v30  ;;  %v7042_v60 = vand.u32 4294901760, %v5906_v55  ;;  %4378 = vmatprep.subr.mxu0 %v5528_v29 }
 0x226   :  { %7174 = vst [vmem:[#allocation37_spill] sm:$0xff] %v5909_v41  ;;  %v2226_v43 = vsub.f32 %v5888_v12, %v7040_v2  ;;  %v7048_v16 = vand.u32 4294901760, %v5909_v41  ;;  %4369 = vmatprep.subr.mxu1 %v2332_v39 }
 0x227   :  { %4370 = vmatpush3.msra.mxu1 %v2220_v3  ;;  %v2345_v7 = vsub.f32 %v5906_v55, %v7042_v60  ;;  %v823_v60 = vand.u32 32, %v5076_v0 }
 0x228   :  { %v2227_v61 = vand.u32 4294901760, %v2226_v43  ;;  %v2233_v47 = vsub.f32 %v5909_v41, %v7048_v16  ;;  %4371 = vmatprep.subr.mxu1 %v2339_v52  ;;  %v824_v52 = vand.u32 32, %v5079_v1 }
 0x229   :  { %v2346_v30 = vand.u32 4294901760, %v2345_v7  ;;  %vm827_vm11 = vcmp.ne.s32.totalorder %v823_v60, 0 }
 0x22a   :  { %4372 = vmatpush3.msra.mxu1 %v2227_v61  ;;  %v2234_v44 = vand.u32 4294901760, %v2233_v47  ;;  %vm828_vm12 = vcmp.ne.s32.totalorder %v824_v52, 0 }
 0x22b   :  { %4373 = vmatprep.subr.mxu1 %v2346_v30 }
 0x22c   :  { %4374 = vmatpush3.msra.mxu1 %v2234_v44  ;;  %v831_v44 = vsel %vm827_vm11, %v5133_v46, %v5135_v51 }
 0x22d   :  { %4413 = vmatprep.subr.mxu1 %v5511_v14 }
 0x28a   :  { %v1049_v39 = vpop.f32.mrf.mxu1 }
 0x28c   :  { %v1051_v2 = vpop.f32.mrf.mxu1 }
 0x292   :  { %v1220_v29 = vpop.f32.mrf.mxu1 }
 0x293   :  { %v937_v11 = vpop.f32.mrf.mxu0 }
 0x294   :  { %v1050_v22 = vadd.f32 %v1049_v39, %v937_v11  ;;  %v1222_v7 = vpop.f32.mrf.mxu1  ;;  %v832_v39 = vsel %vm828_vm12, %v5133_v46, %v5135_v51 }
 0x295   :  { %v939_v3 = vpop.f32.mrf.mxu0 }
 0x296   :  { %v1052_v12 = vadd.f32 %v1051_v2, %v939_v3 }
 0x29b   :  { %v1138_v43 = vpop.f32.mrf.mxu0 }
 0x29c   :  { %v1139_v16 = vadd.f32 %v1138_v43, %v1050_v22  ;;  %v1396_v30 = vpop.f32.mrf.mxu1  ;;  %v835_v22 = vmul.f32 %v831_v44, %v5125_v35  ;;  %v7178_v44 = vld [vmem:[#allocation13_spill] sm:$0xff] }
 0x29d   :  { %v1140_v55 = vpop.f32.mrf.mxu0 }
 0x29e   :  { %v1141_v61 = vadd.f32 %v1140_v55, %v1052_v12  ;;  %v1221_v47 = vadd.f32 %v1220_v29, %v1139_v16  ;;  %v1398_v55 = vpop.f32.mrf.mxu1  ;;  %v836_v29 = vmul.f32 %v832_v39, %v5127_v36  ;;  %v7180_v39 = vld [vmem:[#allocation22_spill] sm:$0xff] }
 0x2a0   :  { %v1223_v11 = vadd.f32 %v1222_v7, %v1141_v61 }
 0x2a5   :  { %v1316_v41 = vpop.f32.mrf.mxu0 }
 0x2a6   :  { %v1317_v49 = vadd.f32 %v1316_v41, %v1221_v47  ;;  %v7176_v47 = vld [vmem:[#allocation12_spill] sm:$0xff] }
 0x2a7   :  { %v1318_v0 = vpop.f32.mrf.mxu0 }
 0x2a8   :  { %v1397_v2 = vadd.f32 %v1396_v30, %v1317_v49  ;;  %v1319_v1 = vadd.f32 %v1318_v0, %v1223_v11  ;;  %v7177_v30 = vld [vmem:[#allocation20_spill] sm:$0xff]  ;;  %v7179_v11 = vld [vmem:[#allocation14_spill] sm:$0xff] }
 0x2aa   :  { %v1944_v12 = vmul.f32 %v1397_v2, %v835_v22  ;;  %v1399_v60 = vadd.f32 %v1398_v55, %v1319_v1  ;;  %v7181_v22 = vld [vmem:[#allocation15_spill] sm:$0xff]  ;;  %v7182_v2 = vld [vmem:[#allocation25_spill] sm:$0xff]  ;;  %v7183_v1 = vld [vmem:[#allocation16_spill] sm:$0xff] }
 0x2ab   :  { %v7184_v55 = vld [vmem:[#allocation26_spill] sm:$0xff] }
 0x2ac   :  { %v5934_v16 = vand.u32 4294901760, %v1944_v12  ;;  %v1945_v3 = vmul.f32 %v1399_v60, %v836_v29  ;;  %v7186_v29 = vld [vmem:[#allocation18_spill] sm:$0xff] }
 0x2ae   :  { %7175 = vst [vmem:[#allocation38_spill] sm:$0xff] %v5934_v16  ;;  %v5937_v43 = vsub.f32 %v1944_v12, %v5934_v16  ;;  %v5939_v41 = vand.u32 4294901760, %v1945_v3  ;;  %v7185_v12 = vld [vmem:[#allocation17_spill] sm:$0xff] }
 0x2af   :  { %v5993_v60 = vpop.f32.mrf.mxu0 }
 0x2b0   :  { %v2109_v52 = vsub.f32 %v1945_v3, %v5939_v41  ;;  %2349 = vmatprep.mubr.f32.mxu1 %v5939_v41  ;;  %v7055_v35 = vand.u32 4294901760, %v5937_v43  ;;  %7187 = vst [vmem:[#allocation12_spill] sm:$0xff] %v5993_v60  ;;  %v7188_v3 = vld [vmem:[#allocation28_spill] sm:$0xff]  ;;  %v7195_v60 = vand.u32 4294901760, %v5937_v43 }
 0x2b1   :  { %2351 = vmatmul.mubr.f32.vlgmr.msra.gmra.mxu1 %v5934_v16  ;;  %v6008_v16 = vpop.f32.mrf.mxu1 }
 0x2b2   :  { %4414 = vmatpush3.msra.mxu1 %v5516_v19  ;;  %v2110_v0 = vand.u32 4294901760, %v2109_v52  ;;  %v2117_v36 = vsub.f32 %v5937_v43, %v7055_v35  ;;  %v7194_v35 = vld [vmem:[#allocation27_spill] sm:$0xff]  ;;  %7196 = vst [vmem:[#allocation20_spill] sm:$0xff] %v6008_v16 }
 0x2b3   :  { %4415 = vmatprep.subr.mxu1 %v5530_v6 }
 0x2b4   :  { %4416 = vmatpush3.msra.mxu1 %v5532_v32  ;;  %2593 = vmatprep.mubr.f32.mxu1 %v2110_v0  ;;  %v2111_v49 = vsub.f32 %v2109_v52, %v2110_v0  ;;  %v2118_v7 = vand.u32 4294901760, %v2117_v36  ;;  %v7190_v0 = vld [vmem:[#allocation29_spill] sm:$0xff] }
 0x2b5   :  { %4417 = vmatprep.subr.mxu1 %v5534_v38  ;;  %v7191_v36 = vld [vmem:[#allocation21_spill] sm:$0xff] }
 0x2b6   :  { %4418 = vmatpush3.msra.mxu1 %v5556_v37  ;;  %v2112_v61 = vand.u32 4294901760, %v2111_v49  ;;  %v7192_v49 = vld [vmem:[#allocation23_spill] sm:$0xff] }
 0x2b7   :  { %4419 = vmatprep.subr.mxu1 %v5578_v24 }
 0x2b8   :  { %4420 = vmatpush3.msra.mxu1 %v5580_v27  ;;  %2113 = vmatprep.mubr.f32.mxu0 %v2112_v61  ;;  %v7193_v61 = vld [vmem:[#allocation24_spill] sm:$0xff] }
 0x2b9   :  { %4421 = vmatprep.subr.mxu1 %v5609_v42  ;;  %2119 = vmatmul.mubr.f32.vlgmr.msra.gmra.mxu0 %v2118_v7  ;;  %v1482_v7 = vpop.f32.mrf.mxu0 }
 0x2ba   :  { %4379 = vmatpush3.msra.mxu0 %v5538_v33  ;;  %4422 = vmatpush3.msra.mxu1 %v5620_v58 }
 0x2bb   :  { %4380 = vmatprep.subr.mxu0 %v5543_v53  ;;  %2486 = vmatprep.mubr.f32.mxu0 %v2109_v52  ;;  %v7189_v52 = vld [vmem:[#allocation19_spill] sm:$0xff] }
 0x2bc   :  { %4423 = vmatprep.subr.mxu1 %v5628_v9  ;;  %4381 = vmatpush3.msra.mxu0 %v5546_v56 }
 0x2bd   :  { %4424 = vmatpush3.msra.mxu1 %v5630_v10  ;;  %4382 = vmatprep.subr.mxu0 %v5549_v59 }
 0x2be   :  { %4425 = vmatprep.subr.mxu1 %v5632_v15  ;;  %4383 = vmatpush3.msra.mxu0 %v5576_v23 }
 0x2bf   :  { %4426 = vmatpush3.msra.mxu1 %v5666_v57  ;;  %4384 = vmatprep.subr.mxu0 %v5600_v63 }
 0x2c0   :  { %4427 = vmatprep.subr.mxu1 %v5682_v50  ;;  %4385 = vmatpush3.msra.mxu0 %v5603_v5 }
 0x2c1   :  { %4428 = vmatpush3.msra.mxu1 %v5684_v25  ;;  %4386 = vmatprep.subr.mxu0 %v5626_v4 }
 0x2c2   :  { %4429 = vmatprep.subr.mxu1 %v5719_v31  ;;  %4387 = vmatpush3.msra.mxu0 %v5645_v40 }
 0x2c3   :  { %4430 = vmatpush3.msra.mxu1 %v5727_v8  ;;  %4388 = vmatprep.subr.mxu0 %v5650_v17 }
 0x2c4   :  { %4431 = vmatprep.subr.mxu1 %v5732_v48  ;;  %4389 = vmatpush3.msra.mxu0 %v5653_v18 }
 0x2c5   :  { %4432 = vmatpush3.msra.mxu1 %v5734_v34  ;;  %4390 = vmatprep.subr.mxu0 %v5656_v28 }
 0x2c6   :  { %4433 = vmatprep.subr.mxu1 %v5736_v20  ;;  %4391 = vmatpush3.msra.mxu0 %v7176_v47 }
 0x2c7   :  { %4434 = vmatpush3.msra.mxu1 %v7177_v30  ;;  %4392 = vmatprep.subr.mxu0 %v7178_v44 }
 0x2c8   :  { %4435 = vmatprep.subr.mxu1 %v5786_v26  ;;  %4393 = vmatpush3.msra.mxu0 %v7179_v11 }
 0x2c9   :  { %4436 = vmatpush3.msra.mxu1 %v7180_v39  ;;  %4394 = vmatprep.subr.mxu0 %v7181_v22 }
 0x2ca   :  { %4437 = vmatprep.subr.mxu1 %v7182_v2  ;;  %4395 = vmatpush3.msra.mxu0 %v7183_v1 }
 0x2cb   :  { %4438 = vmatpush3.msra.mxu1 %v7184_v55  ;;  %4396 = vmatprep.subr.mxu0 %v7185_v12 }
 0x2cc   :  { %4439 = vmatprep.subr.mxu1 %v5836_v62  ;;  %4397 = vmatpush3.msra.mxu0 %v7186_v29 }
 0x2cd   :  { %4440 = vmatpush3.msra.mxu1 %v7188_v3  ;;  %4398 = vmatprep.subr.mxu0 %v7189_v52 }
 0x2ce   :  { %4441 = vmatprep.subr.mxu1 %v7190_v0  ;;  %4399 = vmatpush3.msra.mxu0 %v7191_v36  ;;  %v6010_v36 = vpop.f32.mrf.mxu0 }
 0x2cf   :  { %4442 = vmatpush3.msra.mxu1 %v5874_v13  ;;  %4400 = vmatprep.subr.mxu0 %v7192_v49  ;;  %7197 = vst [vmem:[#allocation13_spill] sm:$0xff] %v6010_v36  ;;  %v7198_v13 = vld [vmem:[#allocation30_spill] sm:$0xff]  ;;  %v1594_v36 = vpop.f32.mrf.mxu1 }
 0x2d0   :  { %4443 = vmatprep.subr.mxu1 %v5890_v45  ;;  %4401 = vmatpush3.msra.mxu0 %v7193_v61  ;;  %v7199_v61 = vld [vmem:[#allocation31_spill] sm:$0xff]  ;;  %v1683_v16 = vpop.f32.mrf.mxu0 }
 0x2d1   :  { %4444 = vmatpush3.msra.mxu1 %v5892_v54  ;;  %4402 = vmatprep.subr.mxu0 %v7194_v35 }
 0x2d2   :  { %2597 = vmatmul.mubr.f32.vlgmr.msra.gmra.mxu1 %v7195_v60  ;;  %4483 = vmatprep.subr.mxu1 %v5511_v14  ;;  %v2011_v14 = vld [vmem:[%s6964_s3 + $0x1f8] sm:$0xff]  ;;  %v7200_v60 = vld [vmem:[#allocation33_spill] sm:$0xff]  ;;  %v6037_v35 = vpop.f32.mrf.mxu0 }
 0x2d3   :  { %4403 = vmatpush3.msra.mxu0 %v7198_v13  ;;  %4484 = vmatpush3.msra.mxu1 %v5516_v19  ;;  %v1995_v19 = vld [vmem:[%s6964_s3 + $0x178] sm:$0xff]  ;;  %v6030_v13 = vand.u32 4294901760, %v2011_v14  ;;  %7205 = vst [vmem:[#allocation15_spill] sm:$0xff] %v6037_v35 }
 0x2d4   :  { %2867 = vmatprep.mubr.f32.mxu1 %v5939_v41  ;;  %4404 = vmatprep.subr.mxu0 %v7199_v61  ;;  %v7201_v61 = vld [vmem:[#allocation35_spill] sm:$0xff] }
 0x2d5   :  { %4485 = vmatprep.subr.mxu1 %v5530_v6  ;;  %4405 = vmatpush3.msra.mxu0 %v5861_v21  ;;  %v1595_v6 = vadd.f32 %v1594_v36, %v1482_v7  ;;  %v7202_v21 = vld [vmem:[#allocation36_spill] sm:$0xff]  ;;  %7203 = vst [vmem:[#allocation14_spill] sm:$0xff] %v6030_v13 }
 0x2d6   :  { %4486 = vmatpush3.msra.mxu1 %v5532_v32  ;;  %4406 = vmatprep.subr.mxu0 %v7200_v60  ;;  %v2010_v32 = vld [vmem:[%s6964_s3 + $0x1f0] sm:$0xff]  ;;  %v6035_v60 = vpop.f32.mrf.mxu1 }
 0x2d7   :  { %4487 = vmatprep.subr.mxu1 %v5534_v38  ;;  %4407 = vmatpush3.msra.mxu0 %v7201_v61  ;;  %7204 = vst [vmem:[#allocation22_spill] sm:$0xff] %v6035_v60  ;;  %v7206_v38 = vld [vmem:[#allocation37_spill] sm:$0xff]  ;;  %v6041_v61 = vand.u32 4294901760, %v1995_v19  ;;  %v1684_v36 = vadd.f32 %v1683_v16, %v1595_v6  ;;  %v7210_v60 = vld [vmem:[#allocation7_spill] sm:$0xff]  ;;  %v6055_v16 = vsub.f32 %v2011_v14, %v6030_v13  ;;  %v1861_v6 = vpop.f32.mrf.mxu0  ;;  %v7216_v14 = vand.u32 4294901760, %v5546_v56 }
 0x2d8   :  { %4488 = vmatpush3.msra.mxu1 %v5556_v37  ;;  %4408 = vmatprep.subr.mxu0 %v7202_v21  ;;  %v7208_v37 = vld [vmem:[#allocation11_spill] sm:$0xff]  ;;  %v6048_v21 = vand.u32 4294901760, %v2010_v32  ;;  %v826_v35 = vand.u32 32, %v7210_v60  ;;  %v1993_v56 = vld [vmem:[%s6964_s3 + $0x168] sm:$0xff] }
 0x2d9   :  { %4489 = vmatprep.subr.mxu1 %v5578_v24  ;;  %4409 = vmatpush3.msra.mxu0 %v7206_v38  ;;  %7207 = vst [vmem:[#allocation25_spill] sm:$0xff] %v6041_v61  ;;  %v7209_v7 = vand.u32 4294901760, %v7208_v37  ;;  %v7211_v24 = vand.u32 4294901760, %v5538_v33  ;;  %7212 = vst [vmem:[#allocation16_spill] sm:$0xff] %v6055_v16  ;;  %v6064_v60 = vsub.f32 %v1995_v19, %v6041_v61  ;;  %v7215_v33 = vld [vmem:[#allocation6_spill] sm:$0xff] }
 0x2da   :  { %4490 = vmatpush3.msra.mxu1 %v5580_v27  ;;  %2489 = vmatmul.mubr.f32.vlgmr.msra.gmra.mxu0 %v5937_v43  ;;  %v1994_v27 = vld [vmem:[%s6964_s3 + $0x170] sm:$0xff]  ;;  %v1765_v43 = vpop.f32.mrf.mxu1  ;;  %v825_v37 = vand.u32 32, %v7215_v33  ;;  %vm6086_vm13 = vcmp.ne.s32.totalorder %v826_v35, 0  ;;  %v1991_v33 = vld [vmem:[%s6964_s3 + $0x158] sm:$0xff] }
 0x2db   :  { %4448 = vmatprep.subr.mxu0 %v7209_v7  ;;  %4491 = vmatprep.subr.mxu1 %v5609_v42  ;;  %v7213_v42 = vand.u32 4294901760, %v5543_v53  ;;  %7214 = vst [vmem:[#allocation26_spill] sm:$0xff] %v6064_v60  ;;  %v2009_v7 = vld [vmem:[%s6964_s3 + $0x1e8] sm:$0xff]  ;;  %v7217_v53 = vand.u32 4294901760, %v5549_v59  ;;  %v6081_v19 = vand.u32 4294901760, %v1994_v27  ;;  %v7060_v59 = vand.u32 4294901760, %v6055_v16 }
 0x2dc   :  { %4449 = vmatpush3.msra.mxu0 %v7211_v24  ;;  %2763 = vmatprep.mubr.f32.mxu0 %v5939_v41  ;;  %v1766_v41 = vadd.f32 %v1765_v43, %v1684_v36  ;;  %v6073_v24 = vpop.f32.mrf.mxu1  ;;  %v7222_v43 = vand.u32 4294901760, %v5600_v63  ;;  %v7061_v35 = vand.u32 4294901760, %v6064_v60  ;;  %vm6109_vm14 = vcmp.ne.s32.totalorder %v825_v37, 0 }
 0x2dd   :  { %4492 = vmatpush3.msra.mxu1 %v5620_v58  ;;  %4450 = vmatprep.subr.mxu0 %v7213_v42  ;;  %v6079_v58 = vsub.f32 %v2010_v32, %v6048_v21  ;;  %v2008_v32 = vld [vmem:[%s6964_s3 + $0x1e0] sm:$0xff]  ;;  %v6101_v42 = vand.u32 4294901760, %v2009_v7  ;;  %v7225_v63 = vand.u32 4294901760, %v5603_v5  ;;  %v834_v37 = vsel %vm6086_vm13, %v5133_v46, %v5135_v51 }
 0x2de   :  { %4493 = vmatprep.subr.mxu1 %v5628_v9  ;;  %4451 = vmatpush3.msra.mxu0 %v7216_v14  ;;  %v1862_v36 = vadd.f32 %v1861_v6, %v1766_v41  ;;  %v1941_v41 = vpop.f32.mrf.mxu1  ;;  %v7226_v14 = vand.u32 4294901760, %v5626_v4  ;;  %v1990_v9 = vld [vmem:[%s6964_s3 + $0x150] sm:$0xff]  ;;  %v7228_v4 = vand.u32 4294901760, %v5645_v40  ;;  %v7229_v40 = vand.u32 4294901760, %v5650_v17 }
 0x2df   :  { %4494 = vmatpush3.msra.mxu1 %v5630_v10  ;;  %4452 = vmatprep.subr.mxu0 %v7217_v53  ;;  %7218 = vst [vmem:[#allocation17_spill] sm:$0xff] %v6079_v58  ;;  %v7221_v10 = vand.u32 4294901760, %v5576_v23  ;;  %v1992_v23 = vld [vmem:[%s6964_s3 + $0x160] sm:$0xff]  ;;  %v6132_v53 = vand.u32 4294901760, %v2008_v32 }
 0x2e0   :  { %4495 = vmatprep.subr.mxu1 %v5632_v15  ;;  %v2007_v15 = vld [vmem:[%s6964_s3 + $0x1d8] sm:$0xff] }
 0x2e1   :  { %4453 = vmatpush3.msra.mxu0 %v7221_v10  ;;  %4496 = vmatpush3.msra.mxu1 %v5666_v57  ;;  %v6116_v57 = vand.u32 4294901760, %v1993_v56  ;;  %v2006_v10 = vld [vmem:[%s6964_s3 + $0x1d0] sm:$0xff] }
 0x2e2   :  { %4454 = vmatprep.subr.mxu0 %v7222_v43  ;;  %4497 = vmatprep.subr.mxu1 %v5682_v50  ;;  %v6130_v50 = vsub.f32 %v1994_v27, %v6081_v19  ;;  %v1942_v43 = vadd.f32 %v1941_v41, %v1862_v36  ;;  %v6148_v27 = vand.u32 4294901760, %v1992_v23  ;;  %v6165_v36 = vsub.f32 %v6064_v60, %v7061_v35  ;;  %v2004_v35 = vld [vmem:[%s6964_s3 + $0x1c0] sm:$0xff] }
 0x2e3   :  { %4455 = vmatpush3.msra.mxu0 %v7225_v63  ;;  %4498 = vmatpush3.msra.mxu1 %v5684_v25  ;;  %v6146_v25 = vsub.f32 %v6055_v16, %v7060_v59  ;;  %v6150_v63 = vand.u32 4294901760, %v2007_v15  ;;  %v6168_v41 = vsub.f32 %v2009_v7, %v6101_v42  ;;  %v7231_v59 = vld [vmem:[#allocation10_spill] sm:$0xff]  ;;  %v6179_v17 = vand.u32 4294901760, %v2006_v10  ;;  %v1989_v7 = vld [vmem:[%s6964_s3 + $0x148] sm:$0xff] }
 0x2e4   :  { %4456 = vmatprep.subr.mxu0 %v7226_v14  ;;  %7227 = vst [vmem:[#allocation18_spill] sm:$0xff] %v6130_v50  ;;  %4499 = vmatprep.subr.mxu1 %v5719_v31  ;;  %v2005_v14 = vld [vmem:[%s6964_s3 + $0x1c8] sm:$0xff]  ;;  %v838_v5 = vmul.f32 %v834_v37, %v7231_v59  ;;  %v7232_v31 = vand.u32 4294901760, %v5653_v18  ;;  %v7234_v59 = vand.u32 4294901760, %v5656_v28  ;;  %v6196_v37 = vsub.f32 %v2008_v32, %v6132_v53 }
 0x2e5   :  { %4457 = vmatpush3.msra.mxu0 %v7228_v4  ;;  %4500 = vmatpush3.msra.mxu1 %v5727_v8  ;;  %7230 = vst [vmem:[#allocation28_spill] sm:$0xff] %v6168_v41  ;;  %v6170_v4 = vand.u32 4294901760, %v1991_v33  ;;  %v6177_v8 = vsub.f32 %v1993_v56, %v6116_v57  ;;  %v7237_v28 = vand.u32 4294901760, %v7176_v47  ;;  %v6211_v32 = vsub.f32 %v2007_v15, %v6150_v63  ;;  %v1988_v56 = vld [vmem:[%s6964_s3 + $0x140] sm:$0xff] }
 0x2e6   :  { %4458 = vmatprep.subr.mxu0 %v7229_v40  ;;  %4501 = vmatprep.subr.mxu1 %v5732_v48  ;;  %v6181_v40 = vand.u32 4294901760, %v1990_v9  ;;  %v7235_v48 = vand.u32 4294901760, %v6079_v58  ;;  %7236 = vst [vmem:[#allocation29_spill] sm:$0xff] %v6196_v37  ;;  %v7062_v47 = vand.u32 4294901760, %v6168_v41  ;;  %v7242_v15 = vand.u32 4294901760, %v7179_v11 }
 0x2e7   :  { %4459 = vmatpush3.msra.mxu0 %v7232_v31  ;;  %7233 = vst [vmem:[#allocation19_spill] sm:$0xff] %v6177_v8  ;;  %4502 = vmatpush3.msra.mxu1 %v5734_v34  ;;  %v6198_v31 = vand.u32 4294901760, %v2005_v14  ;;  %v1947_v34 = vmul.f32 %v1942_v43, %v838_v5  ;;  %7239 = vst [vmem:[#allocation37_spill] sm:$0xff] %v6211_v32  ;;  %v7240_v5 = vand.u32 4294901760, %v7178_v44  ;;  %v7246_v11 = vand.u32 4294901760, %v6130_v50 }
 0x2e8   :  { %4460 = vmatprep.subr.mxu0 %v7234_v59  ;;  %v6192_v18 = vsub.f32 %v6079_v58, %v7235_v48  ;;  %4503 = vmatprep.subr.mxu1 %v5736_v20  ;;  %v6208_v48 = vsub.f32 %v1992_v23, %v6148_v27  ;;  %v6222_v43 = vsub.f32 %v1991_v33, %v6170_v4  ;;  %v6224_v23 = vand.u32 4294901760, %v1989_v7  ;;  %v2003_v33 = vld [vmem:[%s6964_s3 + $0x1b8] sm:$0xff] }
 0x2e9   :  { %4461 = vmatpush3.msra.mxu0 %v7237_v28  ;;  %4504 = vmatpush3.msra.mxu1 %v7177_v30  ;;  %v7063_v28 = vand.u32 4294901760, %v6177_v8  ;;  %v6231_v30 = vsub.f32 %v2006_v10, %v6179_v17  ;;  %v6234_v44 = vsub.f32 %v1990_v9, %v6181_v40  ;;  %v6251_v9 = vsub.f32 %v2005_v14, %v6198_v31  ;;  %v7292_v58 = vld [vmem:[#allocation35_spill] sm:$0xff] }
 0x2ea   :  { %7238 = vst [vmem:[#allocation23_spill] sm:$0xff] %v6208_v48  ;;  %4462 = vmatprep.subr.mxu0 %v7240_v5  ;;  %7241 = vst [vmem:[#allocation11_spill] sm:$0xff] %v6222_v43  ;;  %4505 = vmatprep.subr.mxu1 %v5786_v26  ;;  %v6236_v5 = vand.u32 4294901760, %v2004_v35  ;;  %v7245_v26 = vand.u32 4294901760, %v7181_v22  ;;  %v6253_v20 = vand.u32 4294901760, %v1988_v56  ;;  %v6255_v59 = vand.u32 4294901760, %v1947_v34 }
 0x2eb   :  { %4463 = vmatpush3.msra.mxu0 %v7242_v15  ;;  %7243 = vst [vmem:[#allocation7_spill] sm:$0xff] %v6231_v30  ;;  %7244 = vst [vmem:[#allocation6_spill] sm:$0xff] %v6234_v44  ;;  %4506 = vmatpush3.msra.mxu1 %v7180_v39  ;;  %v6247_v15 = vsub.f32 %v6130_v50, %v7246_v11  ;;  %v7249_v39 = vand.u32 4294901760, %v7183_v1  ;;  %v7065_v11 = vand.u32 4294901760, %v6211_v32  ;;  %v7250_v14 = vand.u32 4294901760, %v7185_v12  ;;  %v1987_v22 = vld [vmem:[%s6964_s3 + $0x138] sm:$0xff] }
 0x2ec   :  { %4464 = vmatprep.subr.mxu0 %v7245_v26  ;;  %7247 = vst [vmem:[#allocation10_spill] sm:$0xff] %v6251_v9  ;;  %7248 = vst [vmem:[#allocation39_spill] sm:$0xff] %v6255_v59  ;;  %4507 = vmatprep.subr.mxu1 %v7182_v2  ;;  %v7064_v26 = vand.u32 4294901760, %v6208_v48  ;;  %v6269_v10 = vsub.f32 %v6168_v41, %v7062_v47  ;;  %v6273_v1 = vsub.f32 %v1989_v7, %v6224_v23  ;;  %v7264_v7 = vld [vmem:[#allocation24_spill] sm:$0xff]  ;;  %v1983_v50 = vld [vmem:[%s6964_s3 + $0x118] sm:$0xff] }
 0x2ed   :  { %4465 = vmatpush3.msra.mxu0 %v7249_v39  ;;  %4508 = vmatpush3.msra.mxu1 %v7184_v55  ;;  %v6275_v39 = vand.u32 4294901760, %v2003_v33  ;;  %v7252_v55 = vand.u32 4294901760, %v7186_v29  ;;  %v6286_v12 = vsub.f32 %v6177_v8, %v7063_v28  ;;  %v6291_v47 = vsub.f32 %v2004_v35, %v6236_v5  ;;  %v7288_v8 = vld [vmem:[#allocation20_spill] sm:$0xff] }
 0x2ee   :  { %4466 = vmatprep.subr.mxu0 %v7250_v14  ;;  %7251 = vst [vmem:[#allocation40_spill] sm:$0xff] %v6273_v1  ;;  %4509 = vmatprep.subr.mxu1 %v5836_v62  ;;  %v7254_v2 = vand.u32 4294901760, %v7189_v52  ;;  %v2998_v62 = vand.u32 4294901760, %v6247_v15  ;;  %v7255_v29 = vand.u32 4294901760, %v6196_v37  ;;  %v6304_v14 = vsub.f32 %v1988_v56, %v6253_v20 }
 0x2ef   :  { %4467 = vmatpush3.msra.mxu0 %v7252_v55  ;;  %7253 = vst [vmem:[#allocation41_spill] sm:$0xff] %v6291_v47  ;;  %4510 = vmatpush3.msra.mxu1 %v7188_v3  ;;  %v6307_v35 = vsub.f32 %v1947_v34, %v6255_v59  ;;  %v7258_v3 = vld [vmem:[#allocation21_spill] sm:$0xff]  ;;  %v6315_v15 = vsub.f32 %v6208_v48, %v7064_v26  ;;  %v6322_v56 = vand.u32 4294901760, %v1987_v22  ;;  %v2002_v34 = vld [vmem:[%s6964_s3 + $0x1b0] sm:$0xff]  ;;  %v7276_v48 = vand.u32 4294901760, %v6165_v36 }
 0x2f0   :  { %4468 = vmatprep.subr.mxu0 %v7254_v2  ;;  %v6300_v55 = vsub.f32 %v6196_v37, %v7255_v29  ;;  %7256 = vst [vmem:[#allocation42_spill] sm:$0xff] %v6304_v14  ;;  %4511 = vmatprep.subr.mxu1 %v7190_v0  ;;  %v7259_v52 = vand.u32 4294901760, %v7258_v3  ;;  %v6320_v2 = vsub.f32 %v6211_v32, %v7065_v11  ;;  %v7260_v0 = vld [vmem:[#allocation34_spill] sm:$0xff]  ;;  %v7261_v29 = vand.u32 4294901760, %v7192_v49 }
 0x2f1   :  { %7257 = vst [vmem:[#allocation43_spill] sm:$0xff] %v6307_v35  ;;  %4512 = vmatpush3.msra.mxu1 %v7260_v0  ;;  %v3117_v3 = vand.u32 4294901760, %v6269_v10  ;;  %v6338_v28 = vsub.f32 %v2003_v33, %v6275_v39  ;;  %v7265_v32 = vand.u32 4294901760, %v7264_v7  ;;  %v3005_v49 = vand.u32 4294901760, %v6286_v12  ;;  %v2001_v33 = vld [vmem:[%s6964_s3 + $0x1a8] sm:$0xff] }
 0x2f2   :  { %4469 = vmatpush3.msra.mxu0 %v7259_v52  ;;  %v7262_v52 = vand.u32 4294901760, %v6222_v43  ;;  %4513 = vmatprep.subr.mxu1 %v5890_v45  ;;  %v7266_v0 = vand.u32 4294901760, %v6231_v30  ;;  %v1986_v45 = vld [vmem:[%s6964_s3 + $0x130] sm:$0xff]  ;;  %v3124_v7 = vand.u32 4294901760, %v6300_v55  ;;  %v3012_v55 = vand.u32 4294901760, %v6315_v15 }
 0x2f3   :  { %4470 = vmatprep.subr.mxu0 %v7261_v29  ;;  %7263 = vst [vmem:[#allocation21_spill] sm:$0xff] %v6338_v28  ;;  %v7267_v29 = vand.u32 4294901760, %v6234_v44  ;;  %4514 = vmatpush3.msra.mxu1 %v5892_v54  ;;  %v7272_v54 = vand.u32 4294901760, %v6146_v25  ;;  %v7277_v15 = vand.u32 4294901760, %v6273_v1  ;;  %v7291_v41 = vand.u32 4294901760, %v6307_v35 }
 0x2f4   :  { %v6334_v26 = vsub.f32 %v6222_v43, %v7262_v52  ;;  %4471 = vmatpush3.msra.mxu0 %v7265_v32  ;;  %v6347_v10 = vsub.f32 %v6231_v30, %v7266_v0  ;;  %v7268_v32 = vld [vmem:[#allocation27_spill] sm:$0xff]  ;;  %v7270_v0 = vand.u32 4294901760, %v6251_v9  ;;  %v7271_v30 = vld [vmem:[#allocation38_spill] sm:$0xff]  ;;  %v7293_v60 = vand.u32 4294901760, %v7292_v58 }
 0x2f5   :  { %v6352_v52 = vsub.f32 %v6234_v44, %v7267_v29  ;;  %v7269_v12 = vand.u32 4294901760, %v7268_v32  ;;  %v6368_v44 = vand.u32 4294901760, %v2002_v34  ;;  %2869 = vmatmul.mubr.f32.vlgmr.msra.gmra.mxu1 %v7271_v30  ;;  %4553 = vmatprep.subr.mxu1 %v7272_v54  ;;  %v3131_v32 = vand.u32 4294901760, %v6320_v2  ;;  %v1985_v29 = vld [vmem:[%s6964_s3 + $0x128] sm:$0xff] }
 0x2f6   :  { %v6365_v11 = vsub.f32 %v6251_v9, %v7270_v0  ;;  %v6380_v0 = vsub.f32 %v1987_v22, %v6322_v56  ;;  %v7274_v9 = vld [vmem:[#allocation30_spill] sm:$0xff]  ;;  %4554 = vmatpush3.msra.mxu1 %v7276_v48  ;;  %v6393_v2 = vsub.f32 %v6273_v1, %v7277_v15  ;;  %v6396_v54 = vand.u32 4294901760, %v1986_v45  ;;  %3211 = vmatprep.mubr.f32.mxu1 %v6255_v59  ;;  %v1984_v1 = vld [vmem:[%s6964_s3 + $0x120] sm:$0xff] }
 0x2f7   :  { %4472 = vmatprep.subr.mxu0 %v7269_v12  ;;  %v7275_v43 = vand.u32 4294901760, %v7274_v9  ;;  %v2000_v12 = vld [vmem:[%s6964_s3 + $0x1a0] sm:$0xff]  ;;  %v7280_v15 = vand.u32 4294901760, %v6291_v47  ;;  %v6411_v22 = vand.u32 4294901760, %v2001_v33  ;;  %v7281_v59 = vand.u32 4294901760, %v6192_v18  ;;  %v1999_v18 = vld [vmem:[%s6964_s3 + $0x198] sm:$0xff] }
 0x2f8   :  { %7273 = vst [vmem:[#allocation34_spill] sm:$0xff] %v6380_v0  ;;  %v7284_v9 = vand.u32 4294901760, %v6304_v14  ;;  %v7299_v16 = vand.u32 4294901760, %v7206_v38  ;;  %v7300_v38 = vand.u32 4294901760, %v6380_v0 }
 0x2f9   :  { %4473 = vmatpush3.msra.mxu0 %v7275_v43  ;;  %v7278_v43 = vld [vmem:[#allocation31_spill] sm:$0xff]  ;;  %v6409_v25 = vsub.f32 %v6291_v47, %v7280_v15  ;;  %4555 = vmatprep.subr.mxu1 %v7281_v59  ;;  %v6427_v15 = vsub.f32 %v2002_v34, %v6368_v44  ;;  %v6429_v47 = vand.u32 4294901760, %v1985_v29  ;;  %v7287_v59 = vld [vmem:[#allocation12_spill] sm:$0xff] }
 0x2fa   :  { %v7279_v36 = vand.u32 4294901760, %v7278_v43  ;;  %v7282_v43 = vld [vmem:[#allocation32_spill] sm:$0xff]  ;;  %v6424_v37 = vsub.f32 %v6304_v14, %v7284_v9  ;;  %4556 = vmatpush3.msra.mxu1 %v2998_v62  ;;  %v2973_v9 = vsub.f32 %v6307_v35, %v7291_v41  ;;  %v6442_v14 = vand.u32 4294901760, %v2000_v12  ;;  %v7306_v35 = vld [vmem:[#allocation15_spill] sm:$0xff] }
 0x2fb   :  { %7285 = vst [vmem:[#allocation24_spill] sm:$0xff] %v6427_v15  ;;  %7286 = vst [vmem:[#allocation27_spill] sm:$0xff] %v6429_v47  ;;  %4557 = vmatprep.subr.mxu1 %v3117_v3  ;;  %v7294_v62 = vand.u32 4294901760, %v6338_v28  ;;  %v6456_v41 = vsub.f32 %v1986_v45, %v6396_v54  ;;  %v7296_v3 = vld [vmem:[#allocation13_spill] sm:$0xff]  ;;  %v1982_v45 = vld [vmem:[%s6964_s3 + $0x110] sm:$0xff] }
 0x2fc   :  { %4474 = vmatprep.subr.mxu0 %v7279_v36  ;;  %v7283_v36 = vand.u32 4294901760, %v7282_v43  ;;  %v1593_v43 = vadd.f32 %v7288_v8, %v7287_v59  ;;  %v6458_v59 = vand.u32 4294901760, %v1984_v1  ;;  %4558 = vmatpush3.msra.mxu1 %v3005_v49  ;;  %v3040_v49 = vand.u32 4294901760, %v6424_v37  ;;  %v7302_v8 = vld [vmem:[#allocation22_spill] sm:$0xff] }
 0x2fd   :  { %7295 = vst [vmem:[#allocation38_spill] sm:$0xff] %v6456_v41  ;;  %4559 = vmatprep.subr.mxu1 %v3124_v7  ;;  %v2974_v7 = vand.u32 4294901760, %v2973_v9  ;;  %v6494_v37 = vsub.f32 %v2000_v12, %v6442_v14  ;;  %v1996_v12 = vld [vmem:[%s6964_s3 + $0x180] sm:$0xff] }
 0x2fe   :  { %4475 = vmatpush3.msra.mxu0 %v7283_v36  ;;  %v7289_v36 = vld [vmem:[#allocation33_spill] sm:$0xff]  ;;  %v1682_v34 = vadd.f32 %v7296_v3, %v1593_v43  ;;  %v6480_v3 = vsub.f32 %v1985_v29, %v6429_v47  ;;  %4560 = vmatpush3.msra.mxu1 %v3012_v55  ;;  %v6505_v9 = vsub.f32 %v1984_v1, %v6458_v59  ;;  %v1980_v1 = vld [vmem:[%s6964_s3 + $0x100] sm:$0xff] }
 0x2ff   :  { %v7290_v48 = vand.u32 4294901760, %v7289_v36  ;;  %v1998_v36 = vld [vmem:[%s6964_s3 + $0x190] sm:$0xff]  ;;  %4561 = vmatprep.subr.mxu1 %v3131_v32 }
 0x300   :  { %v6496_v29 = vand.u32 4294901760, %v1998_v36  ;;  %v1764_v43 = vadd.f32 %v7302_v8, %v1682_v34  ;;  %v7304_v34 = vand.u32 4294901760, %v6427_v15 }
 0x301   :  { %4476 = vmatprep.subr.mxu0 %v7290_v48  ;;  %v6453_v48 = vsub.f32 %v6338_v28, %v7294_v62  ;;  %v6468_v62 = vsub.f32 %v2001_v33, %v6411_v22  ;;  %v6470_v28 = vand.u32 4294901760, %v1999_v18  ;;  %v1997_v33 = vld [vmem:[%s6964_s3 + $0x188] sm:$0xff] }
 0x302   :  { %4477 = vmatpush3.msra.mxu0 %v7293_v60  ;;  %v7297_v60 = vld [vmem:[#allocation36_spill] sm:$0xff]  ;;  %v6518_v55 = vand.u32 4294901760, %v1997_v33  ;;  %v3165_v8 = vsub.f32 %v6427_v15, %v7304_v34  ;;  %v6543_v34 = vand.u32 4294901760, %v1996_v12 }
 0x303   :  { %v7298_v58 = vand.u32 4294901760, %v7297_v60  ;;  %v6482_v60 = vand.u32 4294901760, %v1983_v50 }
 0x305   :  { %4478 = vmatprep.subr.mxu0 %v7298_v58  ;;  %v1981_v58 = vld [vmem:[%s6964_s3 + $0x108] sm:$0xff] }
 0x306   :  { %4479 = vmatpush3.msra.mxu0 %v7299_v16  ;;  %v6491_v16 = vsub.f32 %v6380_v0, %v7300_v38  ;;  %v6507_v38 = vand.u32 4294901760, %v1982_v45  ;;  %v7303_v0 = vand.u32 4294901760, %v6334_v26  ;;  %v6533_v32 = vand.u32 4294901760, %v1981_v58 }
 0x307   :  { %2765 = vmatmul.mubr.f32.vlgmr.msra.gmra.mxu0 %v7271_v30  ;;  %4518 = vmatprep.subr.mxu0 %v6030_v13  ;;  %v3159_v30 = vand.u32 4294901760, %v6453_v48  ;;  %v6516_v48 = vsub.f32 %v1999_v18, %v6470_v28  ;;  %v6531_v18 = vsub.f32 %v1983_v50, %v6482_v60  ;;  %v7307_v13 = vand.u32 4294901760, %v6347_v10 }
 0x308   :  { %7301 = vst [vmem:[#allocation30_spill] sm:$0xff] %v6507_v38  ;;  %4519 = vmatpush3.msra.mxu0 %v6041_v61  ;;  %2975 = vmatprep.mubr.f32.mxu0 %v2974_v7  ;;  %7305 = vst [vmem:[#allocation31_spill] sm:$0xff] %v6533_v32  ;;  %v1860_v61 = vadd.f32 %v7306_v35, %v1764_v43  ;;  %v7308_v7 = vand.u32 4294901760, %v6352_v52  ;;  %v7309_v50 = vand.u32 4294901760, %v6456_v41  ;;  %v6555_v43 = vand.u32 4294901760, %v1980_v1 }
 0x309   :  { %4562 = vmatpush3.msra.mxu1 %v7303_v0  ;;  %4520 = vmatprep.subr.mxu0 %v6048_v21  ;;  %v6541_v0 = vsub.f32 %v1998_v36, %v6496_v29  ;;  %v6553_v10 = vsub.f32 %v1982_v45, %v6507_v38  ;;  %v7310_v36 = vand.u32 4294901760, %v6365_v11  ;;  %v3047_v52 = vand.u32 4294901760, %v6491_v16  ;;  %v7317_v16 = vld [vmem:[#allocation9_spill] sm:$0xff] }
 0x30a   :  { %4563 = vmatprep.subr.mxu1 %v7307_v13  ;;  %4521 = vmatpush3.msra.mxu0 %v6081_v19  ;;  %v3053_v35 = vsub.f32 %v6456_v41, %v7309_v50  ;;  %v7119_v50 = vand.u32 4294901760, %v6516_v48  ;;  %v6566_v13 = vsub.f32 %v1997_v33, %v6518_v55  ;;  %v7312_v45 = vand.u32 4294901760, %v6393_v2 }
 0x30b   :  { %4564 = vmatpush3.msra.mxu1 %v7308_v7  ;;  %4522 = vmatprep.subr.mxu0 %v6101_v42  ;;  %v7311_v7 = vand.u32 4294901760, %v6468_v62  ;;  %v3166_v11 = vand.u32 4294901760, %v3165_v8  ;;  %v6576_v15 = vsub.f32 %v1981_v58, %v6533_v32  ;;  %v7314_v33 = vand.u32 4294901760, %v6409_v25 }
 0x30c   :  { %4565 = vmatprep.subr.mxu1 %v7310_v36  ;;  %4523 = vmatpush3.msra.mxu0 %v6116_v57  ;;  %v7313_v36 = vand.u32 4294901760, %v6480_v3  ;;  %v7315_v2 = vand.u32 4294901760, %v6494_v37  ;;  %v3054_v58 = vand.u32 4294901760, %v3053_v35  ;;  %v3186_v35 = vsub.f32 %v6516_v48, %v7119_v50  ;;  %v7342_v50 = vld [vmem:[#allocation21_spill] sm:$0xff] }
 0x30d   :  { %v3172_v26 = vsub.f32 %v6468_v62, %v7311_v7  ;;  %4566 = vmatpush3.msra.mxu1 %v7312_v45  ;;  %4524 = vmatprep.subr.mxu0 %v6132_v53  ;;  %v1940_v7 = vadd.f32 %v6073_v24, %v1860_v61  ;;  %v7118_v45 = vand.u32 4294901760, %v6541_v0  ;;  %v7316_v61 = vand.u32 4294901760, %v6505_v9 }
 0x30e   :  { %v3060_v41 = vsub.f32 %v6480_v3, %v7313_v36  ;;  %4567 = vmatprep.subr.mxu1 %v7314_v33  ;;  %4525 = vmatpush3.msra.mxu0 %v6148_v27  ;;  %v3179_v8 = vsub.f32 %v6494_v37, %v7315_v2  ;;  %v6587_v36 = vsub.f32 %v1996_v12, %v6543_v34  ;;  %v7319_v6 = vand.u32 4294901760, %v6531_v18 }
 0x30f   :  { %4568 = vmatpush3.msra.mxu1 %v3040_v49  ;;  %4526 = vmatprep.subr.mxu0 %v6150_v63  ;;  %v3067_v24 = vsub.f32 %v6505_v9, %v7316_v61  ;;  %v6595_v33 = vsub.f32 %v1980_v1, %v6555_v43  ;;  %v7318_v12 = vsel %vm6109_vm14, %v5133_v46, %v5135_v51  ;;  %v3173_v49 = vand.u32 4294901760, %v3172_v26 }
 0x310   :  { %v837_v2 = vmul.f32 %v7318_v12, %v7317_v16  ;;  %4569 = vmatprep.subr.mxu1 %v3159_v30  ;;  %4527 = vmatpush3.msra.mxu0 %v6170_v4  ;;  %v7117_v61 = vand.u32 4294901760, %v6566_v13  ;;  %v3061_v1 = vand.u32 4294901760, %v3060_v41  ;;  %v3074_v25 = vsub.f32 %v6531_v18, %v7319_v6 }
 0x311   :  { %4570 = vmatpush3.msra.mxu1 %v3047_v52  ;;  %4528 = vmatprep.subr.mxu0 %v6179_v17  ;;  %v7116_v46 = vand.u32 4294901760, %v6576_v15  ;;  %v3180_v30 = vand.u32 4294901760, %v3179_v8  ;;  %v3193_v26 = vsub.f32 %v6541_v0, %v7118_v45  ;;  %v7115_v52 = vand.u32 4294901760, %v6587_v36  ;;  %v7341_v45 = vld [vmem:[#allocation42_spill] sm:$0xff] }
 0x312   :  { %v1946_v51 = vmul.f32 %v1940_v7, %v837_v2  ;;  %4571 = vmatprep.subr.mxu1 %v3166_v11  ;;  %4529 = vmatpush3.msra.mxu0 %v6181_v40  ;;  %v3068_v41 = vand.u32 4294901760, %v3067_v24  ;;  %v7320_v16 = vand.u32 4294901760, %v6553_v10  ;;  %v7114_v7 = vand.u32 4294901760, %v6595_v33 }
 0x313   :  { %4572 = vmatpush3.msra.mxu1 %v3054_v58  ;;  %4530 = vmatprep.subr.mxu0 %v6198_v31  ;;  %v3187_v11 = vand.u32 4294901760, %v3186_v35  ;;  %v3200_v8 = vsub.f32 %v6566_v13, %v7117_v61  ;;  %v3075_v58 = vand.u32 4294901760, %v3074_v25  ;;  %v3088_v24 = vsub.f32 %v6576_v15, %v7116_v46  ;;  %v7339_v46 = vld [vmem:[#allocation40_spill] sm:$0xff]  ;;  %v7340_v61 = vld [vmem:[#allocation41_spill] sm:$0xff] }
 0x314   :  { %v3081_v12 = vsub.f32 %v6553_v10, %v7320_v16  ;;  %4573 = vmatprep.subr.mxu1 %v3173_v49  ;;  %4531 = vmatpush3.msra.mxu0 %v6224_v23  ;;  %v6631_v2 = vand.u32 4294901760, %v1946_v51  ;;  %v3194_v49 = vand.u32 4294901760, %v3193_v26  ;;  %v3207_v35 = vsub.f32 %v6587_v36, %v7115_v52  ;;  %v7338_v52 = vld [vmem:[#allocation10_spill] sm:$0xff] }
 0x315   :  { %4574 = vmatpush3.msra.mxu1 %v3061_v1  ;;  %4532 = vmatprep.subr.mxu0 %v6236_v5  ;;  %v3095_v25 = vsub.f32 %v6595_v33, %v7114_v7  ;;  %v3201_v6 = vand.u32 4294901760, %v3200_v8  ;;  %v7324_v8 = vld [vmem:[#allocation43_spill] sm:$0xff]  ;;  %v7337_v7 = vld [vmem:[#allocation6_spill] sm:$0xff] }
 0x316   :  { %7321 = vst [vmem:[#allocation32_spill] sm:$0xff] %v6631_v2  ;;  %4575 = vmatprep.subr.mxu1 %v3180_v30  ;;  %4533 = vmatpush3.msra.mxu0 %v6253_v20  ;;  %v3082_v1 = vand.u32 4294901760, %v3081_v12  ;;  %v3089_v30 = vand.u32 4294901760, %v3088_v24  ;;  %v6644_v26 = vsub.f32 %v1946_v51, %v6631_v2  ;;  %v7322_v12 = vld [vmem:[#allocation14_spill] sm:$0xff] }
 0x317   :  { %4576 = vmatpush3.msra.mxu1 %v3068_v41  ;;  %4534 = vmatprep.subr.mxu0 %v6275_v39  ;;  %v3208_v41 = vand.u32 4294901760, %v3207_v35  ;;  %v3096_v16 = vand.u32 4294901760, %v3095_v25  ;;  %v7326_v35 = vld [vmem:[#allocation16_spill] sm:$0xff]  ;;  %v7328_v25 = vld [vmem:[#allocation17_spill] sm:$0xff] }
 0x318   :  { %4577 = vmatprep.subr.mxu1 %v3187_v11  ;;  %4535 = vmatpush3.msra.mxu0 %v6322_v56  ;;  %v7120_v51 = vand.u32 4294901760, %v6644_v26  ;;  %v7323_v11 = vld [vmem:[#allocation25_spill] sm:$0xff] }
 0x319   :  { %4578 = vmatpush3.msra.mxu1 %v3075_v58  ;;  %4536 = vmatprep.subr.mxu0 %v6368_v44  ;;  %v7325_v58 = vand.u32 4294901760, %v7324_v8 }
 0x31a   :  { %4579 = vmatprep.subr.mxu1 %v3194_v49  ;;  %4537 = vmatpush3.msra.mxu0 %v6396_v54  ;;  %v2979_v24 = vsub.f32 %v6644_v26, %v7120_v51  ;;  %v7343_v51 = vld [vmem:[#allocation34_spill] sm:$0xff] }
 0x31b   :  { %4580 = vmatpush3.msra.mxu1 %v3082_v1  ;;  %4538 = vmatprep.subr.mxu0 %v6411_v22  ;;  %v7327_v1 = vld [vmem:[#allocation26_spill] sm:$0xff] }
 0x31c   :  { %4581 = vmatprep.subr.mxu1 %v3201_v6  ;;  %4539 = vmatpush3.msra.mxu0 %v6429_v47  ;;  %v2980_v49 = vand.u32 4294901760, %v2979_v24  ;;  %v7329_v6 = vld [vmem:[#allocation18_spill] sm:$0xff]  ;;  %v7335_v24 = vld [vmem:[#allocation11_spill] sm:$0xff] }
 0x31d   :  { %4582 = vmatpush3.msra.mxu1 %v3089_v30  ;;  %4540 = vmatprep.subr.mxu0 %v6442_v14  ;;  %v7330_v30 = vld [vmem:[#allocation28_spill] sm:$0xff] }
 0x31e   :  { %4583 = vmatprep.subr.mxu1 %v3208_v41  ;;  %4541 = vmatpush3.msra.mxu0 %v6458_v59  ;;  %v7331_v41 = vld [vmem:[#allocation19_spill] sm:$0xff] }
 0x31f   :  { %4584 = vmatpush3.msra.mxu1 %v3096_v16  ;;  %4542 = vmatprep.subr.mxu0 %v6470_v28  ;;  %v7332_v16 = vld [vmem:[#allocation29_spill] sm:$0xff] }
 0x320   :  { %3213 = vmatmul.mubr.f32.vlgmr.msra.gmra.mxu1 %v6631_v2  ;;  %4623 = vmatprep.subr.mxu1 %v7322_v12  ;;  %v7344_v2 = vld [vmem:[#allocation24_spill] sm:$0xff] }
 0x321   :  { %4543 = vmatpush3.msra.mxu0 %v6482_v60  ;;  %4624 = vmatpush3.msra.mxu1 %v7323_v11 }
 0x322   :  { %3455 = vmatprep.mubr.f32.mxu1 %v7325_v58  ;;  %4544 = vmatprep.subr.mxu0 %v6496_v29  ;;  %v7334_v58 = vld [vmem:[#allocation37_spill] sm:$0xff] }
 0x323   :  { %4625 = vmatprep.subr.mxu1 %v6048_v21  ;;  %4545 = vmatpush3.msra.mxu0 %v6507_v38 }
 0x324   :  { %4626 = vmatpush3.msra.mxu1 %v6081_v19  ;;  %4546 = vmatprep.subr.mxu0 %v6518_v55 }
 0x325   :  { %4627 = vmatprep.subr.mxu1 %v6101_v42  ;;  %4547 = vmatpush3.msra.mxu0 %v6533_v32 }
 0x326   :  { %4628 = vmatpush3.msra.mxu1 %v6116_v57  ;;  %4548 = vmatprep.subr.mxu0 %v6543_v34 }
 0x327   :  { %4629 = vmatprep.subr.mxu1 %v6132_v53  ;;  %4549 = vmatpush3.msra.mxu0 %v6555_v43 }
 0x328   :  { %4630 = vmatpush3.msra.mxu1 %v6148_v27  ;;  %2981 = vmatmul.mubr.f32.vlgmr.msra.gmra.mxu0 %v2980_v49  ;;  %v7336_v49 = vld [vmem:[#allocation7_spill] sm:$0xff] }
 0x329   :  { %4588 = vmatprep.subr.mxu0 %v7326_v35  ;;  %4631 = vmatprep.subr.mxu1 %v6150_v63 }
 0x32a   :  { %4589 = vmatpush3.msra.mxu0 %v7327_v1  ;;  %3348 = vmatprep.mubr.f32.mxu0 %v7324_v8  ;;  %v7333_v8 = vld [vmem:[#allocation23_spill] sm:$0xff] }
 0x32b   :  { %4632 = vmatpush3.msra.mxu1 %v6170_v4  ;;  %4590 = vmatprep.subr.mxu0 %v7328_v25 }
 0x32c   :  { %4633 = vmatprep.subr.mxu1 %v6179_v17  ;;  %4591 = vmatpush3.msra.mxu0 %v7329_v6 }
 0x32d   :  { %4634 = vmatpush3.msra.mxu1 %v6181_v40  ;;  %4592 = vmatprep.subr.mxu0 %v7330_v30 }
 0x32e   :  { %4635 = vmatprep.subr.mxu1 %v6198_v31  ;;  %4593 = vmatpush3.msra.mxu0 %v7331_v41 }
 0x32f   :  { %4636 = vmatpush3.msra.mxu1 %v6224_v23  ;;  %4594 = vmatprep.subr.mxu0 %v7332_v16 }
 0x330   :  { %4637 = vmatprep.subr.mxu1 %v6236_v5  ;;  %4595 = vmatpush3.msra.mxu0 %v7333_v8 }
 0x331   :  { %4638 = vmatpush3.msra.mxu1 %v6253_v20  ;;  %4596 = vmatprep.subr.mxu0 %v7334_v58 }
 0x332   :  { %4639 = vmatprep.subr.mxu1 %v6275_v39  ;;  %4597 = vmatpush3.msra.mxu0 %v7335_v24 }
 0x333   :  { %4640 = vmatpush3.msra.mxu1 %v6322_v56  ;;  %4598 = vmatprep.subr.mxu0 %v7336_v49 }
 0x334   :  { %4641 = vmatprep.subr.mxu1 %v6368_v44  ;;  %4599 = vmatpush3.msra.mxu0 %v7337_v7 }
 0x335   :  { %4642 = vmatpush3.msra.mxu1 %v6396_v54  ;;  %4600 = vmatprep.subr.mxu0 %v7338_v52 }
 0x336   :  { %4643 = vmatprep.subr.mxu1 %v6411_v22  ;;  %4601 = vmatpush3.msra.mxu0 %v7339_v46 }
 0x337   :  { %4644 = vmatpush3.msra.mxu1 %v6429_v47  ;;  %4602 = vmatprep.subr.mxu0 %v7340_v61  ;;  %v7345_v47 = vld [vmem:[#allocation38_spill] sm:$0xff] }
 0x338   :  { %4645 = vmatprep.subr.mxu1 %v6442_v14  ;;  %4603 = vmatpush3.msra.mxu0 %v7341_v45 }
 0x339   :  { %4646 = vmatpush3.msra.mxu1 %v6458_v59  ;;  %4604 = vmatprep.subr.mxu0 %v7342_v50 }
 0x33a   :  { %4647 = vmatprep.subr.mxu1 %v6470_v28  ;;  %4605 = vmatpush3.msra.mxu0 %v7343_v51 }
 0x33b   :  { %4648 = vmatpush3.msra.mxu1 %v6482_v60  ;;  %4606 = vmatprep.subr.mxu0 %v7344_v2 }
 0x33c   :  { %4649 = vmatprep.subr.mxu1 %v6496_v29  ;;  %4607 = vmatpush3.msra.mxu0 %v7345_v47 }
 0x33d   :  { %4650 = vmatpush3.msra.mxu1 %v6507_v38  ;;  %4608 = vmatprep.subr.mxu0 %v6468_v62  ;;  %v7346_v38 = vand.u32 4294901760, %v6644_v26 }
 0x33e   :  { %4651 = vmatprep.subr.mxu1 %v6518_v55  ;;  %4609 = vmatpush3.msra.mxu0 %v6480_v3 }
 0x33f   :  { %4652 = vmatpush3.msra.mxu1 %v6533_v32  ;;  %4610 = vmatprep.subr.mxu0 %v6494_v37  ;;  %v7347_v32 = vld [vmem:[#allocation39_spill] sm:$0xff] }
 0x340   :  { %4653 = vmatprep.subr.mxu1 %v6543_v34  ;;  %4611 = vmatpush3.msra.mxu0 %v6505_v9 }
 0x341   :  { %4654 = vmatpush3.msra.mxu1 %v6555_v43  ;;  %4612 = vmatprep.subr.mxu0 %v6516_v48 }
 0x342   :  { %3459 = vmatmul.mubr.f32.vlgmr.msra.gmra.mxu1 %v7346_v38  ;;  %4693 = vmatprep.subr.mxu1 %v7322_v12  ;;  %v7367_v38 = vand.u32 4294901760, %v7344_v2 }
 0x343   :  { %4613 = vmatpush3.msra.mxu0 %v6531_v18  ;;  %4694 = vmatpush3.msra.mxu1 %v7323_v11 }
 0x344   :  { %3729 = vmatprep.mubr.f32.mxu1 %v7347_v32  ;;  %4614 = vmatprep.subr.mxu0 %v6541_v0 }
 0x345   :  { %4695 = vmatprep.subr.mxu1 %v6048_v21  ;;  %4615 = vmatpush3.msra.mxu0 %v6553_v10  ;;  %v7348_v21 = vand.u32 4294901760, %v7326_v35 }
 0x346   :  { %4696 = vmatpush3.msra.mxu1 %v6081_v19  ;;  %4616 = vmatprep.subr.mxu0 %v6566_v13  ;;  %v7349_v19 = vand.u32 4294901760, %v7327_v1 }
 0x347   :  { %4697 = vmatprep.subr.mxu1 %v6101_v42  ;;  %4617 = vmatpush3.msra.mxu0 %v6576_v15  ;;  %v7350_v42 = vand.u32 4294901760, %v7328_v25 }
 0x348   :  { %4698 = vmatpush3.msra.mxu1 %v6116_v57  ;;  %4618 = vmatprep.subr.mxu0 %v6587_v36  ;;  %v7351_v57 = vand.u32 4294901760, %v7329_v6 }
 0x349   :  { %4699 = vmatprep.subr.mxu1 %v6132_v53  ;;  %4619 = vmatpush3.msra.mxu0 %v6595_v33  ;;  %v7352_v53 = vand.u32 4294901760, %v7330_v30 }
 0x34a   :  { %4700 = vmatpush3.msra.mxu1 %v6148_v27  ;;  %3351 = vmatmul.mubr.f32.vlgmr.msra.gmra.mxu0 %v6644_v26  ;;  %v7353_v27 = vand.u32 4294901760, %v7331_v41 }
 0x34b   :  { %4658 = vmatprep.subr.mxu0 %v7348_v21  ;;  %4701 = vmatprep.subr.mxu1 %v6150_v63  ;;  %v7354_v63 = vand.u32 4294901760, %v7332_v16 }
 0x34c   :  { %4659 = vmatpush3.msra.mxu0 %v7349_v19  ;;  %3625 = vmatprep.mubr.f32.mxu0 %v7347_v32  ;;  %v7369_v32 = vld [vmem:[#allocation30_spill] sm:$0xff] }
 0x34d   :  { %4702 = vmatpush3.msra.mxu1 %v6170_v4  ;;  %4660 = vmatprep.subr.mxu0 %v7350_v42  ;;  %v7355_v4 = vand.u32 4294901760, %v7333_v8 }
 0x34e   :  { %4703 = vmatprep.subr.mxu1 %v6179_v17  ;;  %4661 = vmatpush3.msra.mxu0 %v7351_v57  ;;  %v7356_v17 = vand.u32 4294901760, %v7334_v58 }
 0x34f   :  { %4704 = vmatpush3.msra.mxu1 %v6181_v40  ;;  %4662 = vmatprep.subr.mxu0 %v7352_v53  ;;  %v7357_v40 = vand.u32 4294901760, %v7335_v24 }
 0x350   :  { %4705 = vmatprep.subr.mxu1 %v6198_v31  ;;  %4663 = vmatpush3.msra.mxu0 %v7353_v27  ;;  %v7358_v31 = vand.u32 4294901760, %v7336_v49 }
 0x351   :  { %4706 = vmatpush3.msra.mxu1 %v6224_v23  ;;  %4664 = vmatprep.subr.mxu0 %v7354_v63  ;;  %v7359_v23 = vand.u32 4294901760, %v7337_v7 }
 0x352   :  { %4707 = vmatprep.subr.mxu1 %v6236_v5  ;;  %4665 = vmatpush3.msra.mxu0 %v7355_v4  ;;  %v7361_v5 = vand.u32 4294901760, %v7339_v46 }
 0x353   :  { %4708 = vmatpush3.msra.mxu1 %v6253_v20  ;;  %4666 = vmatprep.subr.mxu0 %v7356_v17  ;;  %v7360_v20 = vand.u32 4294901760, %v7338_v52  ;;  %v3736_v52 = vld [vmem:[%s6965_s4] sm:$0xff] }
 0x354   :  { %4709 = vmatprep.subr.mxu1 %v6275_v39  ;;  %4667 = vmatpush3.msra.mxu0 %v7357_v40  ;;  %v7362_v39 = vld [vmem:[#allocation27_spill] sm:$0xff] }
 0x355   :  { %4710 = vmatpush3.msra.mxu1 %v6322_v56  ;;  %4668 = vmatprep.subr.mxu0 %v7358_v31  ;;  %v7363_v56 = vand.u32 4294901760, %v7340_v61 }
 0x356   :  { %4711 = vmatprep.subr.mxu1 %v6368_v44  ;;  %4669 = vmatpush3.msra.mxu0 %v7359_v23  ;;  %v7364_v44 = vand.u32 4294901760, %v7341_v45 }
 0x357   :  { %4712 = vmatpush3.msra.mxu1 %v6396_v54  ;;  %4670 = vmatprep.subr.mxu0 %v7360_v20  ;;  %v7365_v54 = vand.u32 4294901760, %v7342_v50  ;;  %v7372_v50 = vld [vmem:[#allocation31_spill] sm:$0xff] }
 0x358   :  { %4713 = vmatprep.subr.mxu1 %v6411_v22  ;;  %4671 = vmatpush3.msra.mxu0 %v7361_v5  ;;  %v7366_v22 = vand.u32 4294901760, %v7343_v51  ;;  %v6876_v51 = vand.u32 4294901760, %v3736_v52 }
 0x359   :  { %4714 = vmatpush3.msra.mxu1 %v7362_v39  ;;  %4672 = vmatprep.subr.mxu0 %v7363_v56 }
 0x35a   :  { %4715 = vmatprep.subr.mxu1 %v6442_v14  ;;  %4673 = vmatpush3.msra.mxu0 %v7364_v44  ;;  %v7368_v14 = vand.u32 4294901760, %v7345_v47  ;;  %v7374_v47 = vand.u32 4294901760, %v6505_v9  ;;  %v7381_v9 = vand.u32 4294901760, %v6566_v13  ;;  %v3739_v13 = vld [vmem:[%s6965_s4 + $0x18] sm:$0xff]  ;;  %v6885_v1 = vsub.f32 %v3736_v52, %v6876_v51 }
 0x35b   :  { %4716 = vmatpush3.msra.mxu1 %v6458_v59  ;;  %4674 = vmatprep.subr.mxu0 %v7365_v54  ;;  %v7370_v59 = vand.u32 4294901760, %v6468_v62  ;;  %v7375_v62 = vand.u32 4294901760, %v6516_v48  ;;  %v7382_v48 = vand.u32 4294901760, %v6576_v15  ;;  %v3738_v15 = vld [vmem:[%s6965_s4 + $0x10] sm:$0xff] }
 0x35c   :  { %4717 = vmatprep.subr.mxu1 %v6470_v28  ;;  %4675 = vmatpush3.msra.mxu0 %v7366_v22  ;;  %v7371_v28 = vand.u32 4294901760, %v6480_v3  ;;  %v7377_v3 = vand.u32 4294901760, %v6531_v18  ;;  %v7383_v18 = vand.u32 4294901760, %v6587_v36  ;;  %v6851_v45 = vand.u32 4294901760, %v3738_v15  ;;  %v3737_v36 = vld [vmem:[%s6965_s4 + $0x8] sm:$0xff]  ;;  %s4953_s4 = smov 96  }
 0x35d   :  { %4718 = vmatpush3.msra.mxu1 %v6482_v60  ;;  %4676 = vmatprep.subr.mxu0 %v7367_v38  ;;  %v7373_v60 = vand.u32 4294901760, %v6494_v37  ;;  %v7379_v37 = vmov 0.0   ;;  %v6862_v46 = vand.u32 4294901760, %v3737_v36  ;;  %v3870_v30 = vand.u32 4294901760, %v6885_v1 }
 0x35e   :  { %4719 = vmatprep.subr.mxu1 %v6496_v29  ;;  %4677 = vmatpush3.msra.mxu0 %v7368_v14  ;;  %v7376_v29 = vld [vmem:[#allocation32_spill] sm:$0xff]  ;;  %v6860_v61 = vsub.f32 %v3738_v15, %v6851_v45 }
 0x35f   :  { %4720 = vmatpush3.msra.mxu1 %v7369_v32  ;;  %4678 = vmatprep.subr.mxu0 %v7370_v59  ;;  %v6874_v26 = vsub.f32 %v3737_v36, %v6862_v46  ;;  %v3871_v16 = vsub.f32 %v6885_v1, %v3870_v30 }
 0x360   :  { %4721 = vmatprep.subr.mxu1 %v6518_v55  ;;  %4679 = vmatpush3.msra.mxu0 %v7371_v28  ;;  %v7378_v55 = vand.u32 4294901760, %v6541_v0  ;;  %v7384_v0 = vand.u32 4294901760, %v6595_v33  ;;  %v3856_v2 = vand.u32 4294901760, %v6860_v61 }
 0x361   :  { %4722 = vmatpush3.msra.mxu1 %v7372_v50  ;;  %4680 = vmatprep.subr.mxu0 %v7373_v60  ;;  %v3863_v35 = vand.u32 4294901760, %v6874_v26  ;;  %v3872_v8 = vand.u32 4294901760, %v3871_v16 }
 0x362   :  { %4723 = vmatprep.subr.mxu1 %v6543_v34  ;;  %4681 = vmatpush3.msra.mxu0 %v7374_v47  ;;  %v7380_v34 = vand.u32 4294901760, %v6553_v10  ;;  %v6843_v10 = vand.u32 4294901760, %v3739_v13  ;;  %v3857_v11 = vsub.f32 %v6860_v61, %v3856_v2 }
 0x363   :  { %4724 = vmatpush3.msra.mxu1 %v6555_v43  ;;  %4682 = vmatprep.subr.mxu0 %v7375_v62  ;;  %v3864_v6 = vsub.f32 %v6874_v26, %v3863_v35 }
 0x364   :  { %3731 = vmatmul.mubr.f32.vlgmr.msra.gmra.mxu1 %v7376_v29  ;;  %4683 = vmatpush3.msra.mxu0 %v7377_v3  ;;  %v6849_v43 = vsub.f32 %v3739_v13, %v6843_v10  ;;  %v3858_v25 = vand.u32 4294901760, %v3857_v11 }
 0x365   :  { %4684 = vmatprep.subr.mxu0 %v7378_v55  ;;  %4835 = vmatprep.subr.mxu1 %v7379_v37  ;;  %v3865_v41 = vand.u32 4294901760, %v3864_v6 }
 0x366   :  { %4685 = vmatpush3.msra.mxu0 %v7380_v34  ;;  %4843 = vmatprep.mubr.msk.f32.mxu1 %vm4951_vm0, %v7379_v37  ;;  %v3849_v33 = vand.u32 4294901760, %v6849_v43 }
 0x367   :  { %4686 = vmatprep.subr.mxu0 %v7381_v9 }
 0x368   :  { %4687 = vmatpush3.msra.mxu0 %v7382_v48  ;;  %v3850_v7 = vsub.f32 %v6849_v43, %v3849_v33 }
 0x369   :  { %4688 = vmatprep.subr.mxu0 %v7383_v18 }
 0x36a   :  { %4689 = vmatpush3.msra.mxu0 %v7384_v0  ;;  %v3851_v12 = vand.u32 4294901760, %v3850_v7 }
 0x36b   :  { %3627 = vmatmul.mubr.f32.vlgmr.msra.gmra.mxu0 %v7376_v29  ;;  %4824 = vmatprep.subr.mxu0 %v7379_v37 }
 0x36c   :  { %4832 = vmatprep.mubr.msk.f32.mxu0 %vm4951_vm0, %v7379_v37  ;;  %4825 = vmatpush3.msra.mxu0 %v6843_v10 }
 0x36d   :  { %4826 = vmatprep.subr.mxu0 %v7379_v37  ;;  %4836 = vmatpush3.msra.mxu1 %v3851_v12 }
 0x36e   :  { %4827 = vmatpush3.msra.mxu0 %v6851_v45  ;;  %4837 = vmatprep.subr.mxu1 %v7379_v37 }
 0x36f   :  { %4828 = vmatprep.subr.mxu0 %v7379_v37  ;;  %4838 = vmatpush3.msra.mxu1 %v3858_v25 }
 0x370   :  { %4829 = vmatpush3.msra.mxu0 %v6862_v46  ;;  %4839 = vmatprep.subr.mxu1 %v7379_v37 }
 0x371   :  { %4830 = vmatprep.subr.mxu0 %v7379_v37  ;;  %4840 = vmatpush3.msra.mxu1 %v3865_v41  ;;  %v4375_v24 = vpop.f32.mrf.mxu1 }
 0x372   :  { %4831 = vmatpush3.msra.mxu0 %v6876_v51  ;;  %4841 = vmatprep.subr.mxu1 %v7379_v37 }
 0x373   :  { %4846 = vmatprep.subr.mxu0 %v7379_v37  ;;  %4842 = vmatpush3.msra.mxu1 %v3872_v8  ;;  %v4376_v19 = vpop.f32.mrf.mxu1 }
 0x374   :  { %4857 = vmatprep.subr.mxu1 %v7379_v37  ;;  %v4377_v63 = vadd.f32 %v4376_v19, %v4375_v24 }
 0x379   :  { %v4340_v58 = vpop.f32.mrf.mxu0 }
 0x37b   :  { %v4341_v49 = vpop.f32.mrf.mxu0 }
 0x37c   :  { %v4342_v53 = vadd.f32 %v4341_v49, %v4340_v58 }
 0x37e   :  { %v2353_v40 = vadd.f32 %v4377_v63, %v4342_v53  ;;  %v4954_v63 = vmov 1.0  }
 0x392   :  { %v4445_v42 = vpop.f32.mrf.mxu1 }
 0x394   :  { %v4446_v17 = vpop.f32.mrf.mxu1 }
 0x395   :  { %v4447_v39 = vadd.f32 %v4446_v17, %v4445_v42  ;;  %v4228_v17 = vsel %vm5098_vm2, -1.0, %v4954_v63 }
 0x39a   :  { %v4410_v21 = vpop.f32.mrf.mxu0 }
 0x39c   :  { %v4411_v57 = vpop.f32.mrf.mxu0 }
 0x39d   :  { %v4412_v4 = vadd.f32 %v4411_v57, %v4410_v21 }
 0x39f   :  { %v2491_v20 = vadd.f32 %v4412_v4, %v2353_v40 }
 0x3a1   :  { %v2599_v54 = vadd.f32 %v4447_v39, %v2491_v20  ;;  %v7386_v39 = vld [vmem:[#allocation5_spill] sm:$0xff] }
 0x3a2   :  { %vm4234_vm15 = vcmp.eq.s32.totalorder %v7386_v39, 0  ;;  %vm4252_vm1 = vcmp.eq.s32.totalorder %v7386_v39, 2 }
 0x3b5   :  { %v4515_v31 = vpop.f32.mrf.mxu1 }
 0x3b7   :  { %v4516_v44 = vpop.f32.mrf.mxu1 }
 0x3b8   :  { %v4517_v59 = vadd.f32 %v4516_v44, %v4515_v31 }
 0x3c7   :  { %v4480_v27 = vpop.f32.mrf.mxu0 }
 0x3c9   :  { %v4481_v23 = vpop.f32.mrf.mxu0 }
 0x3ca   :  { %v4482_v56 = vadd.f32 %v4481_v23, %v4480_v27 }
 0x3cc   :  { %v2767_v14 = vadd.f32 %v4482_v56, %v2599_v54 }
 0x3ce   :  { %v2871_v60 = vadd.f32 %v4517_v59, %v2767_v14 }
 0x3e0   :  { %v4585_v22 = vpop.f32.mrf.mxu1 }
 0x3e2   :  { %v4586_v50 = vpop.f32.mrf.mxu1 }
 0x3e3   :  { %v4587_v3 = vadd.f32 %v4586_v50, %v4585_v22 }
 0x3e8   :  { %v4550_v5 = vpop.f32.mrf.mxu0 }
 0x3ea   :  { %v4551_v38 = vpop.f32.mrf.mxu0 }
 0x3eb   :  { %v4552_v28 = vadd.f32 %v4551_v38, %v4550_v5 }
 0x3ed   :  { %v2983_v29 = vadd.f32 %v4552_v28, %v2871_v60 }
 0x3ef   :  { %v3215_v9 = vadd.f32 %v4587_v3, %v2983_v29 }
 0x402   :  { %v4655_v47 = vpop.f32.mrf.mxu1 }
 0x404   :  { %v4656_v34 = vpop.f32.mrf.mxu1 }
 0x405   :  { %v4657_v13 = vadd.f32 %v4656_v34, %v4655_v47 }
 0x40a   :  { %v4620_v32 = vpop.f32.mrf.mxu0 }
 0x40c   :  { %v4621_v62 = vpop.f32.mrf.mxu0 }
 0x40d   :  { %v4622_v55 = vadd.f32 %v4621_v62, %v4620_v32 }
 0x40f   :  { %v3353_v18 = vadd.f32 %v4622_v55, %v3215_v9 }
 0x411   :  { %v3461_v52 = vadd.f32 %v4657_v13, %v3353_v18 }
 0x424   :  { %v4725_v48 = vpop.f32.mrf.mxu1 }
 0x426   :  { %v4726_v15 = vpop.f32.mrf.mxu1 }
 0x427   :  { %v4727_v12 = vadd.f32 %v4726_v15, %v4725_v48 }
 0x42b   :  { %v4690_v0 = vpop.f32.mrf.mxu0 }
 0x42d   :  { %v4691_v36 = vpop.f32.mrf.mxu0 }
 0x42e   :  { %v4692_v7 = vadd.f32 %v4691_v36, %v4690_v0 }
 0x430   :  { %v3629_v11 = vadd.f32 %v4692_v7, %v3461_v52 }
 0x432   :  { %v6900_v25 = vadd.f32 %v4727_v12, %v3629_v11 }
 0x434   :  { %v3741_v6 = vsel %vm287_vm10, %v6900_v25, 0  ;;  %v4229_v27 = vmul.f32 %v6900_v25, %v6900_v25 }
 0x435   :  { %v3812_v41 = vand.u32 4294901760, %v3741_v6 }
 0x436   :  { %v4230_v40 = vmul.f32 %v4229_v27, %v4228_v17 }
 0x437   :  { %v3813_v16 = vsub.f32 %v3741_v6, %v3812_v41  ;;  %4844 = vmatmul.mubr.f32.vlgmr.msra.gmra.mxu1 %v3812_v41 }
 0x438   :  { %4858 = vmatpush3.msra.mxu1 %v6843_v10  ;;  %4865 = vmatprep.mubr.msk.f32.mxu1 %vm4951_vm0, %v7379_v37  ;;  %v4231_v31 = vsel %vm287_vm10, %v4230_v40, 0.0 }
 0x439   :  { %4859 = vmatprep.subr.mxu1 %v7379_v37  ;;  %v3814_v8 = vand.u32 4294901760, %v3813_v16 }
 0x43a   :  { %4860 = vmatpush3.msra.mxu1 %v6851_v45 }
 0x43b   :  { %4861 = vmatprep.subr.mxu1 %v7379_v37  ;;  %v3815_v58 = vsub.f32 %v3813_v16, %v3814_v8 }
 0x43c   :  { %4862 = vmatpush3.msra.mxu1 %v6862_v46 }
 0x43d   :  { %4863 = vmatprep.subr.mxu1 %v7379_v37  ;;  %v3816_v24 = vand.u32 4294901760, %v3815_v58 }
 0x43e   :  { %4864 = vmatpush3.msra.mxu1 %v6876_v51 }
 0x43f   :  { %4866 = vmatmul.mubr.f32.vlgmr.msra.gmra.mxu1 %v3814_v8  ;;  %4879 = vmatprep.subr.mxu1 %v7379_v37 }
 0x440   :  { %4833 = vmatmul.mubr.f32.vlgmr.msra.gmra.mxu0 %v3816_v24  ;;  %4880 = vmatpush3.msra.mxu1 %v6843_v10 }
 0x441   :  { %4847 = vmatpush3.msra.mxu0 %v6849_v43  ;;  %4881 = vmatprep.subr.mxu1 %v7379_v37 }
 0x442   :  { %4848 = vmatprep.subr.mxu0 %v7379_v37  ;;  %4882 = vmatpush3.msra.mxu1 %v6851_v45 }
 0x443   :  { %4849 = vmatpush3.msra.mxu0 %v6860_v61  ;;  %4883 = vmatprep.subr.mxu1 %v7379_v37 }
 0x444   :  { %4850 = vmatprep.subr.mxu0 %v7379_v37  ;;  %4884 = vmatpush3.msra.mxu1 %v6862_v46 }
 0x445   :  { %4851 = vmatpush3.msra.mxu0 %v6874_v26  ;;  %4885 = vmatprep.subr.mxu1 %v7379_v37 }
 0x446   :  { %4852 = vmatprep.subr.mxu0 %v7379_v37  ;;  %4854 = vmatprep.mubr.msk.f32.mxu0 %vm4951_vm0, %v7379_v37 }
 0x447   :  { %4853 = vmatpush3.msra.mxu0 %v6885_v1  ;;  %4886 = vmatpush3.msra.mxu1 %v6876_v51 }
 0x448   :  { %4887 = vmatprep.mubr.msk.f32.mxu1 %vm4951_vm0, %v7379_v37  ;;  %4855 = vmatmul.mubr.f32.vlgmr.msra.gmra.mxu0 %v3813_v16 }
 0x449   :  { %4868 = vmatprep.subr.mxu0 %v7379_v37  ;;  %4888 = vmatmul.mubr.f32.vlgmr.msra.gmra.mxu1 %v3812_v41 }
 0x44a   :  { %4869 = vmatpush3.msra.mxu0 %v3849_v33  ;;  %4876 = vmatprep.mubr.msk.f32.mxu0 %vm4951_vm0, %v7379_v37  ;;  %vm4241_vm0 = vcmp.eq.s32.totalorder %v7386_v39, 1 }
 0x44b   :  { %4870 = vmatprep.subr.mxu0 %v7379_v37 }
 0x44c   :  { %4871 = vmatpush3.msra.mxu0 %v3856_v2 }
 0x44d   :  { %4872 = vmatprep.subr.mxu0 %v7379_v37 }
 0x44e   :  { %4873 = vmatpush3.msra.mxu0 %v3863_v35 }
 0x44f   :  { %4874 = vmatprep.subr.mxu0 %v7379_v37 }
 0x450   :  { %4875 = vmatpush3.msra.mxu0 %v3870_v30 }
 0x451   :  { %4877 = vmatmul.mubr.f32.vlgmr.msra.gmra.mxu0 %v3812_v41 }
 0x4f7   :  { %v3909_v10 = vpop.f32.mrf.mxu1 }
 0x4f9   :  { %v4845_v43 = vpop.f32.mrf.mxu1 }
 0x4ff   :  { %v4066_v45 = vpop.f32.mrf.mxu1 }
 0x500   :  { %v3818_v33 = vpop.f32.mrf.mxu0 }
 0x501   :  { %v4867_v46 = vpop.f32.mrf.mxu1  ;;  %v3910_v2 = vadd.f32 %v3909_v10, %v3818_v33 }
 0x502   :  { %v4834_v51 = vpop.f32.mrf.mxu0 }
 0x508   :  { %v3989_v49 = vpop.f32.mrf.mxu0 }
 0x509   :  { %v4224_v61 = vpop.f32.mrf.mxu1  ;;  %v3990_v42 = vadd.f32 %v3989_v49, %v3910_v2 }
 0x50a   :  { %v4856_v21 = vpop.f32.mrf.mxu0 }
 0x50b   :  { %v4889_v19 = vpop.f32.mrf.mxu1  ;;  %v4067_v26 = vadd.f32 %v4066_v45, %v3990_v42 }
 0x511   :  { %v4149_v35 = vpop.f32.mrf.mxu0 }
 0x512   :  { %v4150_v57 = vadd.f32 %v4149_v35, %v4067_v26 }
 0x513   :  { %v4878_v37 = vpop.f32.mrf.mxu0 }
 0x514   :  { %v4225_v53 = vadd.f32 %v4224_v61, %v4150_v57 }
 0x516   :  { %4245 = vrot.lane.b32.xlu1 %v4225_v53, %s4953_s4  ;;  %v4237_v1 = vmul.f32 %v4225_v53, %v6900_v25 }
 0x518   :  { %v4238_v30 = vsel %vm287_vm10, %v4237_v1, 0.0 }
 0x519   :  { %4239 = vadd.xlane.f32.xlu0 %v4238_v30 }
 0x53a   :  { %4232 = vadd.xlane.f32.xlu1 %v4231_v31 }
 0x588   :  { %v4246_v23 = vpop.permute.xlu1 %4245 }
 0x589   :  { %v4248_v20 = vmul.f32 %v4246_v23, %v6900_v25 }
 0x58b   :  { %v4249_v5 = vsel %vm287_vm10, %v4248_v20, 0.0 }
 0x58c   :  { %4250 = vadd.xlane.f32.xlu0 %v4249_v5 }
 0x5a2   :  { %v4240_v44 = vpop.xlane.xlu0 %4239 }
 0x5a3   :  { %v4242_v22 = vsel %vm4241_vm0, %v4240_v44, 0.0 }
 0x5c3   :  { %v4233_v56 = vpop.xlane.xlu1 %4232 }
 0x5c4   :  { %v4235_v54 = vsel %vm4234_vm15, %v4233_v56, 0.0 }
 0x5c5   :  { %v4243_v38 = vadd.f32 %v4242_v22, %v4235_v54 }
 0x615   :  { %v4251_v14 = vpop.xlane.xlu0 %4250 }
 0x616   :  { %v4253_v32 = vsel %vm4252_vm1, %v4251_v14, 0.0 }
 0x617   :  { %v4254_v59 = vadd.f32 %v4253_v32, %v4243_v38 }
 0x619   :  { %4255 = vst [vmem:[#allocation2] sm:$0xff] %v4254_v59 }
 0x61a   :  { %4930 = shalt.err (!%p4927_p4)
}
 0x61b   :  { %4265 = dma.vmem_to_hbm [thread:$0]  %s4263_s27, 128, %s6966_s5, [#allocation3]  }
 0x61c   :  { %4939 = dma.done.wait [#allocation3], 128  }
 0x61d   :  { %4940 = vsyncadd [#allocation3], 4294967168 }
 0x61e   :  { %4269 = vsyncpa [#allocation3], 1 }

</bundles_post_ra>
